<compile_context>
chip_gen: v7x
topology: tpu7x:2x2x1
jax: 0.10.0
libtpu: 0.0.40
codegen_flags: <defaults>
</compile_context>

<pallas_src>
import jax
import jax.numpy as jnp
from jax.experimental import pallas as pl
from jax.experimental.pallas import tpu as pltpu


def _round_up(x, m):
    return ((x + m - 1) // m) * m


# ----------------------------------------------------------------------------
# Fused kernel: 3x3 conv (taps formed in VMEM) + bias + ReLU, global-avg-pool,
#               selected task head (Linear) -- all in one pallas_call.
# Grid = (batch,).  One padded image per grid step.
# ----------------------------------------------------------------------------
def _make_fused_kernel(H, W, cin, cfp):
    hw = H * W
    inv_hw = 1.0 / hw

    def kernel(task_ref, x_ref, wc_ref, bc_ref, wh_ref, bh_ref, o_ref):
        # task_ref : SMEM (1,) int32  -- scalar-prefetched task index (used in index_maps)
        # x_ref    : (1, H+2, W+2, Cin) f32   zero-padded NHWC image, this batch item
        # wc_ref   : (9, Cin, Cfp)  bf16      conv weight, taps ordered (di, dj)
        # bc_ref   : (1, Cfp)       f32       conv bias
        # wh_ref   : (1, Cfp, NCp)  bf16      selected task-head weight
        # bh_ref   : (1, 1, NCp)    f32       selected task-head bias
        # o_ref    : (1, 1, NCp)    f32       logits (lane-dense, padded classes)
        del task_ref
        xp = x_ref[0]                                   # (H+2, W+2, Cin), stays on-chip

        # 3x3 conv as nine tap matmuls accumulated in f32 (im2col formed in VMEM,
        # never materialized in HBM).  bf16 x bf16 -> f32 on the MXU.
        acc = jnp.zeros((hw, cfp), jnp.float32)
        for di in range(3):
            for dj in range(3):
                tap = xp[di:di + H, dj:dj + W, :]       # (H, W, Cin) static slice
                tap = tap.reshape(hw, cin).astype(jnp.bfloat16)
                acc = acc + jnp.dot(tap, wc_ref[di * 3 + dj],
                                    preferred_element_type=jnp.float32)

        feats = jnp.maximum(acc + bc_ref[...], 0.0)     # bias + ReLU, (HW, Cfp) f32

        # Global average pool (sublane reduce) -> (1, Cfp); bf16 for the head MXU.
        pooled = (jnp.sum(feats, axis=0, keepdims=True) * inv_hw).astype(jnp.bfloat16)

        # Selected task head: Linear(feature_dim -> num_classes[task_idx]).
        logits = jnp.dot(pooled, wh_ref[0],
                         preferred_element_type=jnp.float32) + bh_ref[0]
        o_ref[0] = logits                               # (1, NCp) lane-dense store

    return kernel


# ----------------------------------------------------------------------------
# Parameters (padded, pre-cast to the kernel's native layout).
# ----------------------------------------------------------------------------
def make_params(key, cin, feature_dim, num_classes):
    Cfp = _round_up(feature_dim, 128)
    NCp = _round_up(max(num_classes), 128)
    T = len(num_classes)

    keys = jax.random.split(key, 2 + 2 * T)
    w_conv = jax.random.normal(keys[0], (3, 3, cin, feature_dim), jnp.float32) * 0.05
    b_conv = jax.random.normal(keys[1], (feature_dim,), jnp.float32) * 0.01

    w_conv_p = (jnp.zeros((9, cin, Cfp), jnp.float32)
                .at[:, :, :feature_dim].set(w_conv.reshape(9, cin, feature_dim)))
    b_conv_p = jnp.zeros((1, Cfp), jnp.float32).at[0, :feature_dim].set(b_conv)

    heads_w = jnp.zeros((T, Cfp, NCp), jnp.float32)
    heads_b = jnp.zeros((T, 1, NCp), jnp.float32)
    for i, ncls in enumerate(num_classes):
        w = jax.random.normal(keys[2 + 2 * i], (feature_dim, ncls), jnp.float32) * 0.05
        b = jax.random.normal(keys[3 + 2 * i], (ncls,), jnp.float32) * 0.01
        heads_w = heads_w.at[i, :feature_dim, :ncls].set(w)
        heads_b = heads_b.at[i, 0, :ncls].set(b)

    return {
        "w_conv": w_conv_p.astype(jnp.bfloat16),   # (9, Cin, Cfp)
        "b_conv": b_conv_p,                        # (1, Cfp) f32
        "heads_w": heads_w.astype(jnp.bfloat16),   # (T, Cfp, NCp)
        "heads_b": heads_b,                        # (T, 1, NCp) f32
        "meta": dict(feature_dim=feature_dim, Cfp=Cfp, NCp=NCp,
                     num_classes=tuple(num_classes)),
    }


# ----------------------------------------------------------------------------
# Forward pass wrapper.
# ----------------------------------------------------------------------------
def multitask_forward(x_nchw, params, task_idx):
    """Forward pass of MultiTask_Model ('dense' backbone path)."""
    N, Cin, H, W = x_nchw.shape
    meta = params["meta"]
    Cfp, NCp = meta["Cfp"], meta["NCp"]

    # NCHW -> NHWC, zero spatial pad of 1 (the conv's pad=1).  This padded image
    # is the only per-pixel HBM traffic of the whole forward pass.
    x_nhwc = jnp.transpose(x_nchw, (0, 2, 3, 1))
    xpad = jnp.pad(x_nhwc, ((0, 0), (1, 1), (1, 1), (0, 0)))      # (N, H+2, W+2, Cin) f32

    task = jnp.asarray([task_idx], jnp.int32)                     # scalar prefetch

    kernel = _make_fused_kernel(H, W, Cin, Cfp)
    out_padded = pl.pallas_call(
        kernel,
        out_shape=jax.ShapeDtypeStruct((N, 1, NCp), jnp.float32),
        grid_spec=pltpu.PrefetchScalarGridSpec(
            num_scalar_prefetch=1,
            grid=(N,),
            in_specs=[
                pl.BlockSpec((1, H + 2, W + 2, Cin), lambda b, t: (b, 0, 0, 0)),   # image
                pl.BlockSpec((9, Cin, Cfp),  lambda b, t: (0, 0, 0)),              # conv W
                pl.BlockSpec((1, Cfp),       lambda b, t: (0, 0)),                 # conv b
                pl.BlockSpec((1, Cfp, NCp),  lambda b, t: (t[0], 0, 0)),           # head W (task-selected)
                pl.BlockSpec((1, 1, NCp),    lambda b, t: (t[0], 0, 0)),           # head b (task-selected)
            ],
            out_specs=pl.BlockSpec((1, 1, NCp), lambda b, t: (b, 0, 0)),
        ),
        compiler_params=pltpu.CompilerParams(
            dimension_semantics=("parallel",)),
    )(task, xpad, params["w_conv"], params["b_conv"],
      params["heads_w"], params["heads_b"])

    ncls = meta["num_classes"][task_idx]          # static slice of the lane-dense slab
    return out_padded.reshape(N, NCp)[:, :ncls]


# ----------------------------------------------------------------------------
# Pure-JAX reference mirroring the kernel's bf16-operand / f32-accumulate math.
# ----------------------------------------------------------------------------
def reference_forward(x_nchw, params, task_idx):
    N, Cin, H, W = x_nchw.shape
    meta = params["meta"]
    x_nhwc = jnp.transpose(x_nchw, (0, 2, 3, 1))
    xpad = jnp.pad(x_nhwc, ((0, 0), (1, 1), (1, 1), (0, 0)))
    wc = params["w_conv"].astype(jnp.float32)                     # (9, Cin, Cfp)
    Cfp = wc.shape[-1]

    acc = jnp.zeros((N, H * W, Cfp), jnp.float32)
    for di in range(3):
        for dj in range(3):
            tap = xpad[:, di:di + H, dj:dj + W, :].reshape(N, H * W, Cin)
            tap = tap.astype(jnp.bfloat16).astype(jnp.float32)
            acc = acc + jnp.einsum("npc,cf->npf", tap, wc[di * 3 + dj])
    feats = jnp.maximum(acc + params["b_conv"][0], 0.0)
    pooled = feats.mean(axis=1).astype(jnp.bfloat16).astype(jnp.float32)   # (N, Cfp)
    wh = params["heads_w"][task_idx].astype(jnp.float32)
    logits = pooled @ wh + params["heads_b"][task_idx, 0]
    return logits[:, :meta["num_classes"][task_idx]]


if __name__ == "__main__":
    key = jax.random.PRNGKey(0)
    kx, kp = jax.random.split(key)

    N, Cin, H, W = 2, 4, 16, 16          # small NCHW input (PyTorch convention)
    feature_dim = 32
    num_classes = (10, 7)                # two tasks

    x = jax.random.normal(kx, (N, Cin, H, W), jnp.float32)
    params = make_params(kp, Cin, feature_dim, num_classes)

    for task_idx in range(len(num_classes)):
        out = multitask_forward(x, params, task_idx)
        out = jax.block_until_ready(out)
        ref = reference_forward(x, params, task_idx)
        assert out.shape == (N, num_classes[task_idx]), out.shape
        max_err = float(jnp.max(jnp.abs(out - ref)))
        assert jnp.allclose(out, ref, atol=1e-3, rtol=1e-3), f"task {task_idx} max err {max_err}"

    print("KERNEL_OK")
</pallas_src>

<mosaic_0001>
module attributes {stable_mosaic.version = 11 : i64} {
  func.func @kernel(%arg0: i32, %arg1: memref<1xi32, #tpu.memory_space<smem>>, %arg2: memref<1x18x18x4xf32, #tpu.memory_space<vmem>>, %arg3: memref<9x4x128xbf16, #tpu.memory_space<vmem>>, %arg4: memref<1x128xf32, #tpu.memory_space<vmem>>, %arg5: memref<1x128x128xbf16, #tpu.memory_space<vmem>>, %arg6: memref<1x1x128xf32, #tpu.memory_space<vmem>>, %arg7: memref<1x1x128xf32, #tpu.memory_space<vmem>>) attributes {dimension_semantics = [#tpu.dimension_semantics<parallel>], iteration_bounds = array<i64: 2>, scalar_prefetch = 1 : i64, scratch_operands = 0 : i64, tpu.core_type = #tpu.core_type<tc>, window_params = [{transform_indices = @transform_0, window_bounds = array<i64: 1, 18, 18, 4>}, {pipeline_mode = #tpu.pipeline_mode<synchronous>, transform_indices = @transform_1, window_bounds = array<i64: 9, 4, 128>}, {pipeline_mode = #tpu.pipeline_mode<synchronous>, transform_indices = @transform_2, window_bounds = array<i64: 1, 128>}, {transform_indices = @transform_3, window_bounds = array<i64: 1, 128, 128>}, {transform_indices = @transform_4, window_bounds = array<i64: 1, 1, 128>}, {transform_indices = @transform_5, window_bounds = array<i64: 1, 1, 128>}]} {
    %c0 = arith.constant 0 : index
    %c0_0 = arith.constant 0 : index
    %c0_1 = arith.constant 0 : index
    %c0_2 = arith.constant 0 : index
    %0 = vector.load %arg2[%c0, %c0_0, %c0_1, %c0_2] : memref<1x18x18x4xf32, #tpu.memory_space<vmem>>, vector<1x18x18x4xf32>
    %1 = vector.shape_cast %0 : vector<1x18x18x4xf32> to vector<18x18x4xf32>
    %cst = arith.constant 0.000000e+00 : f32
    %2 = vector.broadcast %cst : f32 to vector<256x128xf32>
    %3 = vector.extract_strided_slice %1 {offsets = [0, 0, 0], sizes = [16, 16, 4], strides = [1, 1, 1]} : vector<18x18x4xf32> to vector<16x16x4xf32>
    %4 = vector.shape_cast %3 : vector<16x16x4xf32> to vector<256x4xf32>
    %5 = arith.truncf %4 : vector<256x4xf32> to vector<256x4xbf16>
    %c0_3 = arith.constant 0 : index
    %c0_4 = arith.constant 0 : index
    %c0_5 = arith.constant 0 : index
    %6 = vector.load %arg3[%c0_3, %c0_4, %c0_5] : memref<9x4x128xbf16, #tpu.memory_space<vmem>>, vector<1x4x128xbf16>
    %7 = vector.shape_cast %6 : vector<1x4x128xbf16> to vector<4x128xbf16>
    %cst_6 = arith.constant dense<0.000000e+00> : vector<256x128xf32>
    %8 = tpu.matmul %5, %7, %cst_6 {dimension_numbers = #tpu.dot_dimension_numbers<[1], [0], [0], [1], [0, 0, 1, 1], [], []>} : vector<256x4xbf16>, vector<4x128xbf16>, vector<256x128xf32> -> vector<256x128xf32>
    %9 = arith.addf %2, %8 : vector<256x128xf32>
    %10 = vector.extract_strided_slice %1 {offsets = [0, 1, 0], sizes = [16, 16, 4], strides = [1, 1, 1]} : vector<18x18x4xf32> to vector<16x16x4xf32>
    %11 = vector.shape_cast %10 : vector<16x16x4xf32> to vector<256x4xf32>
    %12 = arith.truncf %11 : vector<256x4xf32> to vector<256x4xbf16>
    %c1 = arith.constant 1 : index
    %c0_7 = arith.constant 0 : index
    %c0_8 = arith.constant 0 : index
    %13 = vector.load %arg3[%c1, %c0_7, %c0_8] : memref<9x4x128xbf16, #tpu.memory_space<vmem>>, vector<1x4x128xbf16>
    %14 = vector.shape_cast %13 : vector<1x4x128xbf16> to vector<4x128xbf16>
    %cst_9 = arith.constant dense<0.000000e+00> : vector<256x128xf32>
    %15 = tpu.matmul %12, %14, %cst_9 {dimension_numbers = #tpu.dot_dimension_numbers<[1], [0], [0], [1], [0, 0, 1, 1], [], []>} : vector<256x4xbf16>, vector<4x128xbf16>, vector<256x128xf32> -> vector<256x128xf32>
    %16 = arith.addf %9, %15 : vector<256x128xf32>
    %17 = vector.extract_strided_slice %1 {offsets = [0, 2, 0], sizes = [16, 16, 4], strides = [1, 1, 1]} : vector<18x18x4xf32> to vector<16x16x4xf32>
    %18 = vector.shape_cast %17 : vector<16x16x4xf32> to vector<256x4xf32>
    %19 = arith.truncf %18 : vector<256x4xf32> to vector<256x4xbf16>
    %c2 = arith.constant 2 : index
    %c0_10 = arith.constant 0 : index
    %c0_11 = arith.constant 0 : index
    %20 = vector.load %arg3[%c2, %c0_10, %c0_11] : memref<9x4x128xbf16, #tpu.memory_space<vmem>>, vector<1x4x128xbf16>
    %21 = vector.shape_cast %20 : vector<1x4x128xbf16> to vector<4x128xbf16>
    %cst_12 = arith.constant dense<0.000000e+00> : vector<256x128xf32>
    %22 = tpu.matmul %19, %21, %cst_12 {dimension_numbers = #tpu.dot_dimension_numbers<[1], [0], [0], [1], [0, 0, 1, 1], [], []>} : vector<256x4xbf16>, vector<4x128xbf16>, vector<256x128xf32> -> vector<256x128xf32>
    %23 = arith.addf %16, %22 : vector<256x128xf32>
    %24 = vector.extract_strided_slice %1 {offsets = [1, 0, 0], sizes = [16, 16, 4], strides = [1, 1, 1]} : vector<18x18x4xf32> to vector<16x16x4xf32>
    %25 = vector.shape_cast %24 : vector<16x16x4xf32> to vector<256x4xf32>
    %26 = arith.truncf %25 : vector<256x4xf32> to vector<256x4xbf16>
    %c3 = arith.constant 3 : index
    %c0_13 = arith.constant 0 : index
    %c0_14 = arith.constant 0 : index
    %27 = vector.load %arg3[%c3, %c0_13, %c0_14] : memref<9x4x128xbf16, #tpu.memory_space<vmem>>, vector<1x4x128xbf16>
    %28 = vector.shape_cast %27 : vector<1x4x128xbf16> to vector<4x128xbf16>
    %cst_15 = arith.constant dense<0.000000e+00> : vector<256x128xf32>
    %29 = tpu.matmul %26, %28, %cst_15 {dimension_numbers = #tpu.dot_dimension_numbers<[1], [0], [0], [1], [0, 0, 1, 1], [], []>} : vector<256x4xbf16>, vector<4x128xbf16>, vector<256x128xf32> -> vector<256x128xf32>
    %30 = arith.addf %23, %29 : vector<256x128xf32>
    %31 = vector.extract_strided_slice %1 {offsets = [1, 1, 0], sizes = [16, 16, 4], strides = [1, 1, 1]} : vector<18x18x4xf32> to vector<16x16x4xf32>
    %32 = vector.shape_cast %31 : vector<16x16x4xf32> to vector<256x4xf32>
    %33 = arith.truncf %32 : vector<256x4xf32> to vector<256x4xbf16>
    %c4 = arith.constant 4 : index
    %c0_16 = arith.constant 0 : index
    %c0_17 = arith.constant 0 : index
    %34 = vector.load %arg3[%c4, %c0_16, %c0_17] : memref<9x4x128xbf16, #tpu.memory_space<vmem>>, vector<1x4x128xbf16>
    %35 = vector.shape_cast %34 : vector<1x4x128xbf16> to vector<4x128xbf16>
    %cst_18 = arith.constant dense<0.000000e+00> : vector<256x128xf32>
    %36 = tpu.matmul %33, %35, %cst_18 {dimension_numbers = #tpu.dot_dimension_numbers<[1], [0], [0], [1], [0, 0, 1, 1], [], []>} : vector<256x4xbf16>, vector<4x128xbf16>, vector<256x128xf32> -> vector<256x128xf32>
    %37 = arith.addf %30, %36 : vector<256x128xf32>
    %38 = vector.extract_strided_slice %1 {offsets = [1, 2, 0], sizes = [16, 16, 4], strides = [1, 1, 1]} : vector<18x18x4xf32> to vector<16x16x4xf32>
    %39 = vector.shape_cast %38 : vector<16x16x4xf32> to vector<256x4xf32>
    %40 = arith.truncf %39 : vector<256x4xf32> to vector<256x4xbf16>
    %c5 = arith.constant 5 : index
    %c0_19 = arith.constant 0 : index
    %c0_20 = arith.constant 0 : index
    %41 = vector.load %arg3[%c5, %c0_19, %c0_20] : memref<9x4x128xbf16, #tpu.memory_space<vmem>>, vector<1x4x128xbf16>
    %42 = vector.shape_cast %41 : vector<1x4x128xbf16> to vector<4x128xbf16>
    %cst_21 = arith.constant dense<0.000000e+00> : vector<256x128xf32>
    %43 = tpu.matmul %40, %42, %cst_21 {dimension_numbers = #tpu.dot_dimension_numbers<[1], [0], [0], [1], [0, 0, 1, 1], [], []>} : vector<256x4xbf16>, vector<4x128xbf16>, vector<256x128xf32> -> vector<256x128xf32>
    %44 = arith.addf %37, %43 : vector<256x128xf32>
    %45 = vector.extract_strided_slice %1 {offsets = [2, 0, 0], sizes = [16, 16, 4], strides = [1, 1, 1]} : vector<18x18x4xf32> to vector<16x16x4xf32>
    %46 = vector.shape_cast %45 : vector<16x16x4xf32> to vector<256x4xf32>
    %47 = arith.truncf %46 : vector<256x4xf32> to vector<256x4xbf16>
    %c6 = arith.constant 6 : index
    %c0_22 = arith.constant 0 : index
    %c0_23 = arith.constant 0 : index
    %48 = vector.load %arg3[%c6, %c0_22, %c0_23] : memref<9x4x128xbf16, #tpu.memory_space<vmem>>, vector<1x4x128xbf16>
    %49 = vector.shape_cast %48 : vector<1x4x128xbf16> to vector<4x128xbf16>
    %cst_24 = arith.constant dense<0.000000e+00> : vector<256x128xf32>
    %50 = tpu.matmul %47, %49, %cst_24 {dimension_numbers = #tpu.dot_dimension_numbers<[1], [0], [0], [1], [0, 0, 1, 1], [], []>} : vector<256x4xbf16>, vector<4x128xbf16>, vector<256x128xf32> -> vector<256x128xf32>
    %51 = arith.addf %44, %50 : vector<256x128xf32>
    %52 = vector.extract_strided_slice %1 {offsets = [2, 1, 0], sizes = [16, 16, 4], strides = [1, 1, 1]} : vector<18x18x4xf32> to vector<16x16x4xf32>
    %53 = vector.shape_cast %52 : vector<16x16x4xf32> to vector<256x4xf32>
    %54 = arith.truncf %53 : vector<256x4xf32> to vector<256x4xbf16>
    %c7 = arith.constant 7 : index
    %c0_25 = arith.constant 0 : index
    %c0_26 = arith.constant 0 : index
    %55 = vector.load %arg3[%c7, %c0_25, %c0_26] : memref<9x4x128xbf16, #tpu.memory_space<vmem>>, vector<1x4x128xbf16>
    %56 = vector.shape_cast %55 : vector<1x4x128xbf16> to vector<4x128xbf16>
    %cst_27 = arith.constant dense<0.000000e+00> : vector<256x128xf32>
    %57 = tpu.matmul %54, %56, %cst_27 {dimension_numbers = #tpu.dot_dimension_numbers<[1], [0], [0], [1], [0, 0, 1, 1], [], []>} : vector<256x4xbf16>, vector<4x128xbf16>, vector<256x128xf32> -> vector<256x128xf32>
    %58 = arith.addf %51, %57 : vector<256x128xf32>
    %59 = vector.extract_strided_slice %1 {offsets = [2, 2, 0], sizes = [16, 16, 4], strides = [1, 1, 1]} : vector<18x18x4xf32> to vector<16x16x4xf32>
    %60 = vector.shape_cast %59 : vector<16x16x4xf32> to vector<256x4xf32>
    %61 = arith.truncf %60 : vector<256x4xf32> to vector<256x4xbf16>
    %c8 = arith.constant 8 : index
    %c0_28 = arith.constant 0 : index
    %c0_29 = arith.constant 0 : index
    %62 = vector.load %arg3[%c8, %c0_28, %c0_29] : memref<9x4x128xbf16, #tpu.memory_space<vmem>>, vector<1x4x128xbf16>
    %63 = vector.shape_cast %62 : vector<1x4x128xbf16> to vector<4x128xbf16>
    %cst_30 = arith.constant dense<0.000000e+00> : vector<256x128xf32>
    %64 = tpu.matmul %61, %63, %cst_30 {dimension_numbers = #tpu.dot_dimension_numbers<[1], [0], [0], [1], [0, 0, 1, 1], [], []>} : vector<256x4xbf16>, vector<4x128xbf16>, vector<256x128xf32> -> vector<256x128xf32>
    %65 = arith.addf %58, %64 : vector<256x128xf32>
    %c0_31 = arith.constant 0 : index
    %c0_32 = arith.constant 0 : index
    %66 = vector.load %arg4[%c0_31, %c0_32] : memref<1x128xf32, #tpu.memory_space<vmem>>, vector<1x128xf32>
    %67 = vector.broadcast %66 : vector<1x128xf32> to vector<256x128xf32>
    %68 = arith.addf %65, %67 : vector<256x128xf32>
    %cst_33 = arith.constant 0.000000e+00 : f32
    %69 = vector.broadcast %cst_33 : f32 to vector<256x128xf32>
    %70 = arith.maximumf %68, %69 : vector<256x128xf32>
    %cst_34 = arith.constant dense<0.000000e+00> : vector<128xf32>
    %71 = vector.multi_reduction <add>, %70, %cst_34 [0] : vector<256x128xf32> to vector<128xf32>
    %72 = vector.shape_cast %71 : vector<128xf32> to vector<1x128xf32>
    %cst_35 = arith.constant 3.906250e-03 : f32
    %73 = vector.broadcast %cst_35 : f32 to vector<1x128xf32>
    %74 = arith.mulf %72, %73 : vector<1x128xf32>
    %75 = arith.truncf %74 : vector<1x128xf32> to vector<1x128xbf16>
    %c0_36 = arith.constant 0 : index
    %c0_37 = arith.constant 0 : index
    %c0_38 = arith.constant 0 : index
    %76 = vector.load %arg5[%c0_36, %c0_37, %c0_38] : memref<1x128x128xbf16, #tpu.memory_space<vmem>>, vector<1x128x128xbf16>
    %77 = vector.shape_cast %76 : vector<1x128x128xbf16> to vector<128x128xbf16>
    %cst_39 = arith.constant dense<0.000000e+00> : vector<1x128xf32>
    %78 = tpu.matmul %75, %77, %cst_39 {dimension_numbers = #tpu.dot_dimension_numbers<[1], [0], [0], [1], [0, 0, 1, 1], [], []>} : vector<1x128xbf16>, vector<128x128xbf16>, vector<1x128xf32> -> vector<1x128xf32>
    %c0_40 = arith.constant 0 : index
    %c0_41 = arith.constant 0 : index
    %c0_42 = arith.constant 0 : index
    %79 = vector.load %arg6[%c0_40, %c0_41, %c0_42] : memref<1x1x128xf32, #tpu.memory_space<vmem>>, vector<1x1x128xf32>
    %80 = vector.shape_cast %79 : vector<1x1x128xf32> to vector<1x128xf32>
    %81 = arith.addf %78, %80 : vector<1x128xf32>
    %c0_43 = arith.constant 0 : index
    %c0_44 = arith.constant 0 : index
    %c0_45 = arith.constant 0 : index
    %82 = vector.load %arg7[%c0_43, %c0_44, %c0_45] : memref<1x1x128xf32, #tpu.memory_space<vmem>>, vector<1x1x128xf32>
    %83 = vector.shape_cast %82 : vector<1x1x128xf32> to vector<1x128xf32>
    %84 = vector.shape_cast %81 : vector<1x128xf32> to vector<1x1x128xf32>
    tpu.vector_store %arg7[%c0_43, %c0_44, %c0_45], %84 {strides = array<i32>} : memref<1x1x128xf32, #tpu.memory_space<vmem>>, vector<1x1x128xf32>,
    return
  }
  func.func @transform_0(%arg0: i32, %arg1: memref<1xi32, #tpu.memory_space<smem>>) -> (i32, i32, i32, i32) {
    %c0_i32 = arith.constant 0 : i32
    %c0_i32_0 = arith.constant 0 : i32
    %c0_i32_1 = arith.constant 0 : i32
    %c0_i32_2 = arith.constant 0 : i32
    return %arg0, %c0_i32, %c0_i32_0, %c0_i32_1 : i32, i32, i32, i32
  }
  func.func @transform_1(%arg0: i32, %arg1: memref<1xi32, #tpu.memory_space<smem>>) -> (i32, i32, i32) {
    %c0_i32 = arith.constant 0 : i32
    %c0_i32_0 = arith.constant 0 : i32
    %c0_i32_1 = arith.constant 0 : i32
    %c0_i32_2 = arith.constant 0 : i32
    return %c0_i32, %c0_i32_0, %c0_i32_1 : i32, i32, i32
  }
  func.func @transform_2(%arg0: i32, %arg1: memref<1xi32, #tpu.memory_space<smem>>) -> (i32, i32) {
    %c0_i32 = arith.constant 0 : i32
    %c0_i32_0 = arith.constant 0 : i32
    %c0_i32_1 = arith.constant 0 : i32
    return %c0_i32, %c0_i32_0 : i32, i32
  }
  func.func @transform_3(%arg0: i32, %arg1: memref<1xi32, #tpu.memory_space<smem>>) -> (i32, i32, i32) {
    %c0 = arith.constant 0 : index
    %0 = memref.load %arg1[%c0] : memref<1xi32, #tpu.memory_space<smem>>
    %c0_i32 = arith.constant 0 : i32
    %c0_i32_0 = arith.constant 0 : i32
    %c0_i32_1 = arith.constant 0 : i32
    return %0, %c0_i32, %c0_i32_0 : i32, i32, i32
  }
  func.func @transform_4(%arg0: i32, %arg1: memref<1xi32, #tpu.memory_space<smem>>) -> (i32, i32, i32) {
    %c0 = arith.constant 0 : index
    %0 = memref.load %arg1[%c0] : memref<1xi32, #tpu.memory_space<smem>>
    %c0_i32 = arith.constant 0 : i32
    %c0_i32_0 = arith.constant 0 : i32
    %c0_i32_1 = arith.constant 0 : i32
    return %0, %c0_i32, %c0_i32_0 : i32, i32, i32
  }
  func.func @transform_5(%arg0: i32, %arg1: memref<1xi32, #tpu.memory_space<smem>>) -> (i32, i32, i32) {
    %c0_i32 = arith.constant 0 : i32
    %c0_i32_0 = arith.constant 0 : i32
    %c0_i32_1 = arith.constant 0 : i32
    return %arg0, %c0_i32, %c0_i32_0 : i32, i32, i32
  }
}

</mosaic_0001>

<bundles_post_ra>
// kernel: tpu_custom_call.1
= control target key start
LH: loop header
LB: loop body
LE: loop exit
PB: predicated region body
PF: predicated region fallthrough
CT: control target
= control target key end

     0   :  { %s5003_s0 = inlined_call_operand.<no memory space> [shape: s32[1], index: 0, kind: input, shape index: {}]   ;;  %s5004_s1 = inlined_call_operand.vmem [shape: f32[2,18,18,4], index: 1, kind: input, shape index: {}]   ;;  %s5005_s2 = inlined_call_operand.vmem [shape: bf16[9,4,128], index: 2, kind: input, shape index: {}]   ;;  %s5006_s3 = inlined_call_operand.vmem [shape: f32[1,128], index: 3, kind: input, shape index: {}]   ;;  %s5007_s4 = inlined_call_operand.vmem [shape: bf16[2,128,128], index: 4, kind: input, shape index: {}]   ;;  %s5008_s5 = inlined_call_operand.vmem [shape: f32[2,1,128], index: 5, kind: input, shape index: {}]   ;;  %s5009_s6 = inlined_call_operand.hbm [shape: f32[2,1,128], index: 6, kind: output, shape index: {}]  }
   0x1   :  { %11 = sst [smem:[#allocation3]] %s5003_s0 }
   0x2   :  { %12 = vsyncpa [#allocation5], 0 }
   0x3   :  { %14 = vsyncpa [#allocation5 + $0x1], 0  ;;  %s3961_s23 = smov 0   ;;  %s3963_s24 = smov 0  }
   0x4   :  { %s3965_s25 = smov 0   ;;  %s3967_s26 = smov 0  }
   0x5 LB: > { %s3982_s0 = sadd.s32 4294967295, %s3918_s26   ;;  %s2881_s27 = sadd.s32 4294967294, %s3918_s26   ;;  %s3918_s26 = sphi %s3967_s26, %s5076_s26   ;;  %s3914_s25 = sphi %s3965_s25, %s5075_s25   ;;  %s3910_s24 = sphi %s3963_s24, %s5074_s24   ;;  %s3906_s23 = sphi %s3961_s23, %s5073_s23  }
   0x6   : > { %s3986_s28 = sadd.s32 1, %s3918_s26   ;;  %s151_s29 = sadd.s32 1, %s3914_s25 }
   0x7   : > { %s148_s30 = ssub.s32 %s3918_s26, %s3986_s28  ;;  %p161_p0 = scmp.ne.s32.totalorder %s3914_s25, %s3910_s24 }
   0x8   : > { %p149_p1 = scmp.eq.s32.totalorder %s148_s30, 0  ;;  %p162_p2 = scmp.eq.s32.totalorder %s3982_s0, 1 }
   0x9   : > { %p167_p3 = scmp.ne.s32.totalorder %s3910_s24, %s3906_s23  ;;  %p168_p4 = scmp.eq.s32.totalorder %s2881_s27, 1 }
   0xa   : > { %s3997_s7 = scalar_select %p149_p1, %s3914_s25, %s151_s29  }
   0xb   : > { %p3999_p5 = por %p162_p2, %p161_p0  ;;  %p4003_p6 = por %p168_p4, %p167_p3 }
   0xc   : > { %p2884_p7 = scmp.ge.s32.totalorder %s3918_s26, 1  ;;  %p218_p8 = scmp.lt.s32.totalorder %s3918_s26, 3 }
   0xe   : > { %p219_p9 = pnand %p2884_p7, %p218_p8 }
  0x10   : > { %222 = sbr.rel (%p219_p9) target bundleno = 824 (0x338), region = 40 }
  0x17   : > { %vm572_vm0 = vcmask 1041408   ;;  %v2955_v0 = vld [vmem:[%s5005_s2 + $0x8] sm:$0x3]  ;;  %v2888_v1 = vld [vmem:[%s5005_s2 + $0x2] sm:$0x3]  ;;  %p255_p10 = scmp.lt.s32.totalorder %s3982_s0, 1 }
  0x18   : > { %3801 = vmatprep.subr.msk.bf16.mxu0 %vm572_vm0, %v2955_v0  ;;  %3797 = vmatprep.subr.msk.bf16.mxu1 %vm572_vm0, %v2888_v1  ;;  %v1543_v2 = vsel %vm572_vm0, %v2955_v0, 0  ;;  %v574_v3 = vsel %vm572_vm0, %v2888_v1, 0  ;;  %v2972_v4 = vld [vmem:[%s5005_s2 + $0xa] sm:$0x3]  ;;  %v343_v5 = vld [vmem:[%s5005_s2] sm:$0x3] }
  0x19   : > { %3352 = vmatpush3.bf16.msra.mxu0 %v1543_v2  ;;  %3216 = vmatpush3.bf16.msra.mxu1 %v574_v3  ;;  %s256_s16 = scalar_select %p255_p10, %s3982_s0, 1  ;;  %vm392_vm1 = vcmask 1046528   ;;  %vm523_vm2 = vcmask 31744   ;;  %v786_v38 = vsel %vm572_vm0, %v343_v5, 0  ;;  %v1752_v40 = vsel %vm572_vm0, %v2972_v4, 0 }
  0x1a   : > { %3802 = vmatprep.subr.msk.bf16.mxu0 %vm572_vm0, %v2972_v4  ;;  %3798 = vmatprep.subr.msk.bf16.mxu1 %vm572_vm0, %v343_v5  ;;  %v4128_v56 = vld [vmem:[%s5005_s2 + $0xc] sm:$0x3]  ;;  %vm949_vm3 = vcmask 1045504   ;;  %s260_s17 = sld [smem:[#allocation3]]  ;;  %vm3921_vm4 = vmmov 0   ;;  %s253_s29 = sand.u32 1, %s3910_s24  }
  0x1b   : > { %s3806_s19 = smul.u32 432, %s256_s16  ;;  %5041 = vst [vmem:[#allocation16_spill] sm:$0xff] %v4128_v56  ;;  %s3049_s12 = sshll.u32 %s3982_s0, 4 }
  0x1c   : > { %s254_s13 = scalar_lea.vmem [#allocation4], %s253_s29 }
  0x1d   : > { %s4032_s22 = scalar_lea.vmem %s5004_s1, %s3806_s19  ;;  %s2799_s14 = sshll.u32 %s254_s13, 4  ;;  %s4963_s14 = int_to_ptr.vmem [resolvable:$true] %s2799_s14 }
  0x1e   : > { %v4035_v6 = vld [vmem:[%s4032_s22] sm:$0xff]  ;;  %v4038_v7 = vld [vmem:[%s4032_s22 + $0x8] sm:$0xff]  ;;  %v4041_v8 = vld [vmem:[%s4032_s22 + $0x10] sm:$0x3]  ;;  %s3856_s0 = scalar_lea.vmem %s4963_s14, 16  ;;  %s3922_s19 = smov [#allocation4]  }
  0x1f   : > { %5032 = vst [vmem:[#allocation7_spill] sm:$0xff] %v4035_v6  ;;  %5033 = vst [vmem:[#allocation8_spill] sm:$0xff] %v4038_v7  ;;  %v393_v9 = vrot.slane %v4035_v6, 1  ;;  %v394_v10 = vrot.slane %v4038_v7, 1  ;;  %v396_v11 = vrot.slane %v4041_v8, 1  ;;  %v4047_v12 = vld [vmem:[%s4032_s22 + $0x18] sm:$0xff]  ;;  %p3857_p12 = scmp.ne.s32.totalorder %s4963_s14, %s3856_s0 }
  0x20   : > { %5034 = vst [vmem:[#allocation9_spill] sm:$0xff] %v4041_v8  ;;  %5035 = vst [vmem:[#allocation10_spill] sm:$0xff] %v4047_v12  ;;  %v4050_v13 = vld [vmem:[%s4032_s22 + $0x20] sm:$0xff]  ;;  %v4053_v14 = vld [vmem:[%s4032_s22 + $0x28] sm:$0x3]  ;;  %v398_v16 = vrot.slane %v4047_v12, 1 }
  0x21   : > { %5036 = vst [vmem:[#allocation11_spill] sm:$0xff] %v4050_v13  ;;  %5037 = vst [vmem:[#allocation12_spill] sm:$0xff] %v4053_v14  ;;  %v4057_v15 = vpack.c.bf16 %v4050_v13, %v4047_v12  ;;  %v4061_v17 = vld [vmem:[%s4032_s22 + $0x30] sm:$0xff]  ;;  %v395_v18 = vsel %vm392_vm1, %v393_v9, %v394_v10  ;;  %v397_v19 = vsel %vm392_vm1, %v394_v10, %v396_v11  ;;  %v399_v20 = vrot.slane %v4050_v13, 1  ;;  %v4068_v22 = vld [vmem:[%s4032_s22 + $0x38] sm:$0xff]  ;;  %p261_p11 = scmp.lt.s32.totalorder %s260_s17, 1  ;;  %p3858_p13 = pnand %p3857_p12, %p3999_p5 }
  0x22   : > { %v401_v21 = vrot.slane %v4053_v14, 1  ;;  %v4071_v23 = vld [vmem:[%s4032_s22 + $0x40] sm:$0x3]  ;;  %v505_v24 = vpack.c.bf16 %v397_v19, %v395_v18  ;;  %v4074_v25 = vld [vmem:[%s4032_s22 + $0x48] sm:$0xff]  ;;  %v4077_v26 = vld [vmem:[%s4032_s22 + $0x50] sm:$0xff]  ;;  %v403_v29 = vrot.slane %v4061_v17, 1 }
  0x23   : > { %5038 = vst [vmem:[#allocation13_spill] sm:$0xff] %v4057_v15  ;;  %v400_v27 = vsel %vm392_vm1, %v398_v16, %v399_v20  ;;  %v404_v30 = vrot.slane %v4068_v22, 1  ;;  %v4084_v31 = vld [vmem:[%s4032_s22 + $0x58] sm:$0x3]  ;;  %v4087_v32 = vld [vmem:[%s4032_s22 + $0x60] sm:$0xff]  ;;  %v4090_v33 = vld [vmem:[%s4032_s22 + $0x68] sm:$0xff]  ;;  %p3859_p0 = pneg %p3858_p13 }
  0x24   : > { %v402_v28 = vsel %vm392_vm1, %v399_v20, %v401_v21  ;;  %5039 = vst [vmem:[#allocation14_spill] sm:$0xff] %v4084_v31  ;;  %3217 = vmatprep.mubr.msk.bf16.mxu1 %vm523_vm2, %v505_v24  ;;  %v406_v35 = vrot.slane %v4071_v23, 1  ;;  %v4095_v36 = vld [vmem:[%s4032_s22 + $0x70] sm:$0x3]  ;;  %v4098_v37 = vld [vmem:[%s4032_s22 + $0x78] sm:$0xff]  ;;  %v408_v41 = vrot.slane %v4074_v25, 1 }
  0x25   : > { %v506_v34 = vpack.c.bf16 %v402_v28, %v400_v27  ;;  %v405_v39 = vsel %vm392_vm1, %v403_v29, %v404_v30  ;;  %v409_v42 = vrot.slane %v4077_v26, 1  ;;  %v4106_v43 = vld [vmem:[%s4032_s22 + $0x80] sm:$0xff]  ;;  %v4109_v44 = vld [vmem:[%s4032_s22 + $0x88] sm:$0x3]  ;;  %v411_v46 = vrot.slane %v4084_v31, 1  ;;  %v4137_v58 = vld [vmem:[%s4032_s22 + $0x90] sm:$0xff] }
  0x26   : > { %v407_v45 = vsel %vm392_vm1, %v404_v30, %v406_v35  ;;  %v413_v47 = vrot.slane %v4087_v32, 1  ;;  %v414_v48 = vrot.slane %v4090_v33, 1  ;;  %v416_v51 = vrot.slane %v4095_v36, 1  ;;  %v4142_v61 = vld [vmem:[%s4032_s22 + $0x98] sm:$0xff]  ;;  %v4145_v62 = vld [vmem:[%s4032_s22 + $0xa0] sm:$0x3] }
  0x27   : > { %3353 = vmatprep.mubr.msk.bf16.mxu0 %vm523_vm2, %v506_v34  ;;  %3218 = vmatmul.mubr.msk.bf16.vlgmr.msra.gmra.mrb[0].mxu1 %vm523_vm2, %v506_v34  ;;  %v4117_v49 = vpack.c.bf16 %v407_v45, %v405_v39  ;;  %v410_v50 = vsel %vm392_vm1, %v408_v41, %v409_v42  ;;  %v418_v52 = vrot.slane %v4098_v37, 1  ;;  %v412_v53 = vsel %vm392_vm1, %v409_v42, %v411_v46  ;;  %v4148_v63 = vld [vmem:[%s4032_s22 + $0xa8] sm:$0xff]  ;;  %v4155_v2 = vld [vmem:[%s4032_s22 + $0xb0] sm:$0xff]  ;;  %v4158_v3 = vld [vmem:[%s4032_s22 + $0xb8] sm:$0x3]  ;;  %s5078_s17 = smov (!%p261_p11, %s260_s17), 1 }
  0x28   : > { %3250 = vmatpush3.bf16.msra.mxu1 %v786_v38  ;;  %v419_v54 = vrot.slane %v4106_v43, 1  ;;  %v421_v55 = vrot.slane %v4109_v44, 1  ;;  %v4134_v57 = vpack.c.bf16 %v412_v53, %v410_v50  ;;  %v415_v59 = vsel %vm392_vm1, %v413_v47, %v414_v48  ;;  %v4161_v4 = vld [vmem:[%s4032_s22 + $0xc0] sm:$0xff]  ;;  %v4168_v10 = vld [vmem:[%s4032_s22 + $0xc8] sm:$0xff]  ;;  %v4171_v11 = vld [vmem:[%s4032_s22 + $0xd0] sm:$0x3]  ;;  %s270_s11 = scalar_lea.vmem %s5008_s5, %s5078_s17 }
  0x29   : > { %5040 = vst [vmem:[#allocation15_spill] sm:$0xff] %v4117_v49  ;;  %3354 = vmatmul.mubr.msk.bf16.vlgmr.msra.gmra.mrb[0].mxu0 %vm523_vm2, %v4117_v49  ;;  %3221 = vmatprep.mubr.msk.bf16.mxu1 %vm523_vm2, %v4117_v49  ;;  %v417_v60 = vsel %vm392_vm1, %v414_v48, %v416_v51  ;;  %v4174_v16 = vld [vmem:[%s4032_s22 + $0xd8] sm:$0xff]  ;;  %v423_v19 = vrot.slane %v4137_v58, 1  ;;  %v424_v20 = vrot.slane %v4142_v61, 1  ;;  %v426_v21 = vrot.slane %v4145_v62, 1  ;;  %v4182_v24 = vld [vmem:[%s4032_s22 + $0xe0] sm:$0xff] }
  0x2a   : > { %5042 = vst [vmem:[#allocation17_spill] sm:$0xff] %v4134_v57  ;;  %3386 = vmatpush3.bf16.msra.mxu0 %v1752_v40  ;;  %3357 = vmatprep.mubr.msk.bf16.mxu0 %vm523_vm2, %v4134_v57  ;;  %v420_v0 = vsel %vm392_vm1, %v418_v52, %v419_v54  ;;  %v422_v1 = vsel %vm392_vm1, %v419_v54, %v421_v55  ;;  %v4185_v27 = vld [vmem:[%s4032_s22 + $0xe8] sm:$0x3]  ;;  %v428_v29 = vrot.slane %v4148_v63, 1  ;;  %v429_v30 = vrot.slane %v4155_v2, 1  ;;  %v4195_v35 = vld [vmem:[%s4032_s22 + $0xf0] sm:$0xff] }
  0x2b   : > { %3803 = vmatprep.subr.msk.bf16.mxu0 %vm572_vm0, %v4128_v56  ;;  %v4176_v18 = vpack.c.bf16 %v417_v60, %v415_v59  ;;  %v4189_v28 = vpack.c.bf16 %v422_v1, %v420_v0  ;;  %v431_v34 = vrot.slane %v4158_v3, 1  ;;  %v4198_v38 = vld [vmem:[%s4032_s22 + $0xf8] sm:$0xff]  ;;  %v433_v40 = vrot.slane %v4161_v4, 1  ;;  %v4205_v41 = vld [vmem:[%s4032_s22 + $0x100] sm:$0x3]  ;;  %v4208_v42 = vld [vmem:[%s4032_s22 + $0x108] sm:$0xff] }
  0x2c   : > { %v4211_v45 = vld [vmem:[%s4032_s22 + $0x110] sm:$0xff]  ;;  %v434_v46 = vrot.slane %v4168_v10, 1  ;;  %v436_v47 = vrot.slane %v4171_v11, 1  ;;  %v438_v48 = vrot.slane %v4174_v16, 1  ;;  %v439_v50 = vrot.slane %v4182_v24, 1  ;;  %v4227_v59 = vld [vmem:[%s4032_s22 + $0x120] sm:$0xff] }
  0x2d   : > { %5043 = vst [vmem:[#allocation18_spill] sm:$0xff] %v4176_v18  ;;  %5044 = vst [vmem:[#allocation19_spill] sm:$0xff] %v4189_v28  ;;  %v4218_v51 = vld [vmem:[%s4032_s22 + $0x118] sm:$0x3]  ;;  %v425_v53 = vsel %vm392_vm1, %v423_v19, %v424_v20  ;;  %v427_v54 = vsel %vm392_vm1, %v424_v20, %v426_v21  ;;  %v441_v55 = vrot.slane %v4185_v27, 1  ;;  %v4230_v60 = vld [vmem:[%s4032_s22 + $0x128] sm:$0xff]  ;;  %v430_v1 = vsel %vm392_vm1, %v428_v29, %v429_v30 }
  0x2e   : > { %v4235_v0 = vld [vmem:[%s5005_s2 + $0x4] sm:$0x3]  ;;  %v432_v19 = vsel %vm392_vm1, %v429_v30, %v431_v34  ;;  %v443_v20 = vrot.slane %v4195_v35, 1  ;;  %v444_v21 = vrot.slane %v4198_v38, 1  ;;  %v4244_v5 = vld [vmem:[%s4032_s22 + $0x130] sm:$0x3]  ;;  %v435_v49 = vsel %vm392_vm1, %v433_v40, %v434_v46 }
  0x2f   : > { %3222 = vmatmul.mubr.msk.bf16.gmra.mrb[4].mxu1 %vm523_vm2, %v4134_v57  ;;  %5045 = vst [vmem:[#allocation20_spill] sm:$0xff] %v4235_v0  ;;  %v4247_v9 = vld [vmem:[%s4032_s22 + $0x138] sm:$0xff]  ;;  %v4250_v39 = vld [vmem:[%s4032_s22 + $0x140] sm:$0xff]  ;;  %3799 = vmatprep.subr.msk.bf16.mxu1 %vm572_vm0, %v4235_v0  ;;  %v446_v52 = vrot.slane %v4205_v41, 1  ;;  %v449_v29 = vrot.slane %v4211_v45, 1  ;;  %v451_v30 = vrot.slane %v4218_v51, 1  ;;  %v4261_v57 = vpack.c.bf16 %v427_v54, %v425_v53 }
  0x30   : > { %3225 = vmatprep.mubr.msk.bf16.mxu1 %vm523_vm2, %v4176_v18  ;;  %5046 = vst [vmem:[#allocation21_spill] sm:$0xff] %v4250_v39  ;;  %v4259_v34 = vld [vmem:[%s4032_s22 + $0x148] sm:$0x3]  ;;  %v437_v56 = vsel %vm392_vm1, %v434_v46, %v436_v47  ;;  %v440_v15 = vsel %vm392_vm1, %v438_v48, %v439_v50  ;;  %v442_v0 = vsel %vm392_vm1, %v439_v50, %v441_v55  ;;  %v453_v31 = vrot.slane %v4227_v59, 1  ;;  %v4278_v48 = vld [vmem:[%s4032_s22 + $0x150] sm:$0xff]  ;;  %v4281_v50 = vld [vmem:[%s4032_s22 + $0x158] sm:$0xff] }
  0x31   : > { %3358 = vmatmul.mubr.msk.bf16.gmra.mrb[4].mxu0 %vm523_vm2, %v4176_v18  ;;  %v448_v18 = vrot.slane %v4208_v42, 1  ;;  %5047 = vst [vmem:[#allocation22_spill] sm:$0xff] %v4259_v34  ;;  %5048 = vst [vmem:[#allocation23_spill] sm:$0xff] %v4261_v57  ;;  %v454_v14 = vrot.slane %v4230_v60, 1  ;;  %v456_v13 = vrot.slane %v4244_v5, 1  ;;  %v4272_v53 = vpack.c.bf16 %v432_v19, %v430_v1  ;;  %s3052_s18 = sshll.u32 %s5078_s17, 6 }
  0x32   : > { %3361 = vmatprep.mubr.msk.bf16.mxu0 %vm523_vm2, %v4189_v28  ;;  %v458_v40 = vrot.slane %v4247_v9, 1  ;;  %v459_v46 = vrot.slane %v4250_v39, 1  ;;  %v461_v47 = vrot.slane %v4259_v34, 1  ;;  %v445_v54 = vsel %vm392_vm1, %v443_v20, %v444_v21  ;;  %v4296_v34 = vld [vmem:[%s4032_s22 + $0x160] sm:$0x3]  ;;  %v4299_v39 = vld [vmem:[%s4032_s22 + $0x168] sm:$0xff]  ;;  %s4833_s21 = scalar_lea.vmem %s5007_s4, %s3052_s18  ;;  %s4961_s18 = scalar_lea.hbm %s5009_s6, %s3049_s12 }
  0x33   : > { %v447_v55 = vsel %vm392_vm1, %v444_v21, %v446_v52  ;;  %v450_v1 = vsel %vm392_vm1, %v448_v18, %v449_v29  ;;  %v452_v19 = vsel %vm392_vm1, %v449_v29, %v451_v30  ;;  %v963_v12 = vrot.slane %v4071_v23, 2  ;;  %v4302_v20 = vld [vmem:[%s4032_s22 + $0x170] sm:$0xff]  ;;  %s2787_s17 = scalar_lea.sflag [#allocation5], %s253_s29  ;;  %s3860_s20 = sshll.u32 %s3922_s19, 4  ;;  %s3861_s20 = int_to_ptr.vmem [resolvable:$false] %s3860_s20 }
  0x34   : > { %v4291_v6 = vpack.c.bf16 %v437_v56, %v435_v49  ;;  %v4293_v7 = vpack.c.bf16 %v442_v0, %v440_v15  ;;  %v455_v18 = vsel %vm392_vm1, %v453_v31, %v454_v14  ;;  %v457_v52 = vsel %vm392_vm1, %v454_v14, %v456_v13  ;;  %v4311_v49 = vld [vmem:[%s4032_s22 + $0x178] sm:$0x3]  ;;  %p3863_p1 = scmp.lt.s32.totalorder %s4963_s14, %s3861_s20 }
  0x35   : > { %v463_v21 = vrot.slane %v4278_v48, 1  ;;  %v464_v23 = vrot.slane %v4281_v50, 1  ;;  %v4315_v15 = vpack.c.bf16 %v447_v55, %v445_v54  ;;  %v4317_v56 = vpack.c.bf16 %v452_v19, %v450_v1 }
  0x36   : > { %v460_v0 = vsel %vm392_vm1, %v458_v40, %v459_v46  ;;  %v462_v29 = vsel %vm392_vm1, %v459_v46, %v461_v47  ;;  %v466_v31 = vrot.slane %v4296_v34, 1  ;;  %v468_v13 = vrot.slane %v4299_v39, 1 }
  0x37   : > { %3226 = vmatmul.mubr.msk.bf16.gmra.mrb[8].mxu1 %vm523_vm2, %v4189_v28  ;;  %v469_v14 = vrot.slane %v4302_v20, 1  ;;  %v5049_v30 = vrot.slane %v4068_v22, 2  ;;  %v5050_v28 = vrot.slane %v4061_v17, 2  ;;  %v4329_v54 = vpack.c.bf16 %v457_v52, %v455_v18 }
  0x38   : > { %3229 = vmatprep.mubr.msk.bf16.mxu1 %vm523_vm2, %v4261_v57  ;;  %v471_v55 = vrot.slane %v4311_v49, 1  ;;  %v4337_v47 = vpack.c.bf16 %v4068_v22, %v4061_v17  ;;  %v4339_v1 = vpack.c.bf16 %v462_v29, %v460_v0  ;;  %v4342_v19 = vsel %vm392_vm1, %v463_v21, %v464_v23 }
  0x39   : > { %3362 = vmatmul.mubr.msk.bf16.gmra.mrb[8].mxu0 %vm523_vm2, %v4261_v57  ;;  %v962_v57 = vsel %vm949_vm3, %v5050_v28, %v5049_v30  ;;  %v5051_v40 = vmov %v5049_v30  ;;  %v4348_v28 = vpack.c.bf16 %v4077_v26, %v4074_v25  ;;  %v971_v18 = vrot.slane %v4090_v33, 2 }
  0x3a   : > { %3365 = vmatprep.mubr.msk.bf16.mxu0 %vm523_vm2, %v4272_v53  ;;  %v964_v46 = vsel %vm949_vm3, %v5051_v40, %v963_v12  ;;  %v970_v12 = vrot.slane %v4087_v32, 2  ;;  %v973_v17 = vrot.slane %v4095_v36, 2  ;;  %v4357_v22 = vpack.c.bf16 %v4090_v33, %v4087_v32 }
  0x3b   : > { %v4344_v8 = vpack.c.bf16 %v964_v46, %v962_v57  ;;  %v4362_v57 = vsel %vm392_vm1, %v464_v23, %v466_v31  ;;  %v4365_v52 = vsel %vm392_vm1, %v468_v13, %v469_v14  ;;  %v975_v21 = vrot.slane %v4098_v37, 2 }
  0x3c   : > { %v976_v0 = vrot.slane %v4106_v43, 2  ;;  %v4370_v29 = vsel %vm392_vm1, %v469_v14, %v471_v55  ;;  %v972_v36 = vsel %vm949_vm3, %v970_v12, %v971_v18  ;;  %v974_v32 = vsel %vm949_vm3, %v971_v18, %v973_v17 }
  0x3d   : > { %v978_v33 = vrot.slane %v4109_v44, 2  ;;  %v4377_v23 = vpack.c.bf16 %v974_v32, %v972_v36  ;;  %v4382_v13 = vpack.c.bf16 %v4106_v43, %v4098_v37  ;;  %v980_v14 = vrot.slane %v4137_v58, 2 }
  0x3e   : > { %v977_v31 = vsel %vm949_vm3, %v975_v21, %v976_v0  ;;  %v981_v44 = vrot.slane %v4142_v61, 2  ;;  %v983_v55 = vrot.slane %v4145_v62, 2  ;;  %v4392_v40 = vpack.c.bf16 %v4142_v61, %v4137_v58 }
  0x3f   : > { %3230 = vmatmul.mubr.msk.bf16.gmra.mrb[12].mxu1 %vm523_vm2, %v4272_v53  ;;  %v979_v30 = vsel %vm949_vm3, %v976_v0, %v978_v33  ;;  %v985_v37 = vrot.slane %v4148_v63, 2  ;;  %v986_v43 = vrot.slane %v4155_v2, 2  ;;  %v988_v12 = vrot.slane %v4158_v3, 2 }
  0x40   : > { %3233 = vmatprep.mubr.msk.bf16.mxu1 %vm523_vm2, %v4291_v6  ;;  %v4394_v46 = vpack.c.bf16 %v979_v30, %v977_v31  ;;  %v982_v18 = vsel %vm949_vm3, %v980_v14, %v981_v44  ;;  %v984_v17 = vsel %vm949_vm3, %v981_v44, %v983_v55  ;;  %v4403_v21 = vpack.c.bf16 %v4155_v2, %v4148_v63 }
  0x41   : > { %3366 = vmatmul.mubr.msk.bf16.gmra.mrb[12].mxu0 %vm523_vm2, %v4291_v6  ;;  %v990_v62 = vrot.slane %v4161_v4, 2  ;;  %v4406_v58 = vpack.c.bf16 %v984_v17, %v982_v18  ;;  %v987_v61 = vsel %vm949_vm3, %v985_v37, %v986_v43  ;;  %v989_v0 = vsel %vm949_vm3, %v986_v43, %v988_v12 }
  0x42   : > { %3369 = vmatprep.mubr.msk.bf16.mxu0 %vm523_vm2, %v4293_v7  ;;  %v991_v36 = vrot.slane %v4168_v10, 2  ;;  %v4413_v3 = vpack.c.bf16 %v989_v0, %v987_v61  ;;  %v993_v32 = vrot.slane %v4171_v11, 2  ;;  %v4418_v63 = vpack.c.bf16 %v4168_v10, %v4161_v4 }
  0x43   : > { %v995_v2 = vrot.slane %v4174_v16, 2  ;;  %v996_v31 = vrot.slane %v4182_v24, 2  ;;  %v998_v14 = vrot.slane %v4185_v27, 2  ;;  %v4428_v30 = vpack.c.bf16 %v4182_v24, %v4174_v16 }
  0x44   : > { %v992_v33 = vsel %vm949_vm3, %v990_v62, %v991_v36  ;;  %v994_v11 = vsel %vm949_vm3, %v991_v36, %v993_v32  ;;  %v1000_v4 = vrot.slane %v4195_v35, 2  ;;  %v1001_v10 = vrot.slane %v4198_v38, 2 }
  0x45   : > { %v1003_v44 = vrot.slane %v4205_v41, 2  ;;  %v4436_v55 = vpack.c.bf16 %v994_v11, %v992_v33  ;;  %v997_v37 = vsel %vm949_vm3, %v995_v2, %v996_v31  ;;  %v999_v27 = vsel %vm949_vm3, %v996_v31, %v998_v14  ;;  %v5052_v33 = vld [vmem:[#allocation21_spill] sm:$0xff] }
  0x46   : > { %v4442_v16 = vpack.c.bf16 %v4198_v38, %v4195_v35  ;;  %v4446_v24 = vpack.c.bf16 %v999_v27, %v997_v37  ;;  %v1002_v41 = vsel %vm949_vm3, %v1000_v4, %v1001_v10  ;;  %v1005_v12 = vrot.slane %v4208_v42, 2 }
  0x47   : > { %3234 = vmatmul.mubr.msk.bf16.gmra.mrb[16].mxu1 %vm523_vm2, %v4293_v7  ;;  %v1004_v43 = vsel %vm949_vm3, %v1001_v10, %v1003_v44  ;;  %v1006_v17 = vrot.slane %v4211_v45, 2  ;;  %v1008_v62 = vrot.slane %v4218_v51, 2  ;;  %v4457_v35 = vpack.c.bf16 %v4211_v45, %v4208_v42 }
  0x48   : > { %3237 = vmatprep.mubr.msk.bf16.mxu1 %vm523_vm2, %v4315_v15  ;;  %v4451_v18 = vpack.c.bf16 %v1004_v43, %v1002_v41  ;;  %v1010_v38 = vrot.slane %v4227_v59, 2  ;;  %v1011_v61 = vrot.slane %v4230_v60, 2  ;;  %v1013_v0 = vrot.slane %v4244_v5, 2  ;;  %v321_v43 = vld [vmem:[%s4032_s22 + $0x180] sm:$0xff] }
  0x49   : > { %3370 = vmatmul.mubr.msk.bf16.gmra.mrb[16].mxu0 %vm523_vm2, %v4315_v15  ;;  %v4464_v36 = vpack.c.bf16 %v4230_v60, %v4227_v59  ;;  %v1007_v32 = vsel %vm949_vm3, %v1005_v12, %v1006_v17  ;;  %v1009_v2 = vsel %vm949_vm3, %v1006_v17, %v1008_v62  ;;  %v1015_v51 = vrot.slane %v4247_v9, 2  ;;  %v5053_v59 = vld [vmem:[#allocation22_spill] sm:$0xff] }
  0x4a   : > { %3373 = vmatprep.mubr.msk.bf16.mxu0 %vm523_vm2, %v4317_v56  ;;  %v1016_v31 = vrot.slane %v5052_v33, 2  ;;  %v4472_v42 = vpack.c.bf16 %v1009_v2, %v1007_v32  ;;  %v1012_v5 = vsel %vm949_vm3, %v1010_v38, %v1011_v61  ;;  %v1014_v45 = vsel %vm949_vm3, %v1011_v61, %v1013_v0  ;;  %v323_v0 = vld [vmem:[%s4032_s22 + $0x190] sm:$0x3] }
  0x4b   : > { %v1018_v60 = vrot.slane %v5053_v59, 2  ;;  %v4479_v14 = vpack.c.bf16 %v1014_v45, %v1012_v5  ;;  %v4484_v4 = vpack.c.bf16 %v5052_v33, %v4247_v9  ;;  %v1020_v10 = vrot.slane %v4278_v48, 2  ;;  %v5054_v45 = vld [vmem:[#allocation8_spill] sm:$0xff] }
  0x4c   : > { %v1017_v11 = vsel %vm949_vm3, %v1015_v51, %v1016_v31  ;;  %v1021_v37 = vrot.slane %v4281_v50, 2  ;;  %v1023_v27 = vrot.slane %v4296_v34, 2  ;;  %v4492_v41 = vpack.c.bf16 %v4281_v50, %v4278_v48  ;;  %v322_v34 = vld [vmem:[%s4032_s22 + $0x188] sm:$0xff] }
  0x4d   : > { %v1019_v44 = vsel %vm949_vm3, %v1016_v31, %v1018_v60  ;;  %v1025_v9 = vrot.slane %v4299_v39, 2  ;;  %v1026_v17 = vrot.slane %v4302_v20, 2  ;;  %v1028_v62 = vrot.slane %v4311_v49, 2  ;;  %v5056_v60 = vld [vmem:[#allocation7_spill] sm:$0xff] }
  0x4e   : > { %v4497_v12 = vpack.c.bf16 %v1019_v44, %v1017_v11  ;;  %v1022_v38 = vsel %vm949_vm3, %v1020_v10, %v1021_v37  ;;  %v1024_v48 = vsel %vm949_vm3, %v1021_v37, %v1023_v27  ;;  %v4509_v50 = vpack.c.bf16 %v4302_v20, %v4299_v39  ;;  %v5058_v37 = vld [vmem:[#allocation9_spill] sm:$0xff] }
  0x4f   : > { %3238 = vmatmul.mubr.msk.bf16.gmra.mrb[20].mxu1 %vm523_vm2, %v4317_v56  ;;  %v1738_v61 = vrot.slane %v321_v43, 2  ;;  %v4512_v32 = vpack.c.bf16 %v1024_v48, %v1022_v38  ;;  %v1027_v2 = vsel %vm949_vm3, %v1025_v9, %v1026_v17  ;;  %v1029_v49 = vsel %vm949_vm3, %v1026_v17, %v1028_v62  ;;  %v5061_v48 = vld [vmem:[#allocation10_spill] sm:$0xff] }
  0x50   : > { %3241 = vmatprep.mubr.msk.bf16.mxu1 %vm523_vm2, %v4329_v54  ;;  %v1739_v51 = vrot.slane %v322_v34, 2  ;;  %v1529_v33 = vrot.slane %v321_v43, 1  ;;  %v4516_v31 = vpack.c.bf16 %v1029_v49, %v1027_v2  ;;  %v1741_v5 = vrot.slane %v323_v0, 2  ;;  %v5062_v2 = vld [vmem:[#allocation11_spill] sm:$0xff] }
  0x51   : > { %3374 = vmatmul.mubr.msk.bf16.gmra.mrb[20].mxu0 %vm523_vm2, %v4329_v54  ;;  %v5055_v59 = vrot.slane %v5054_v45, 2  ;;  %v5057_v11 = vrot.slane %v5056_v60, 2  ;;  %v4527_v20 = vpack.c.bf16 %v4362_v57, %v4342_v19  ;;  %v1530_v10 = vrot.slane %v322_v34, 1 }
  0x52   : > { %3377 = vmatprep.mubr.msk.bf16.mxu0 %vm523_vm2, %v4339_v1  ;;  %v1740_v44 = vsel %vm949_vm3, %v1738_v61, %v1739_v51  ;;  %v5059_v27 = vrot.slane %v5058_v37, 2  ;;  %v4541_v62 = vpack.c.bf16 %v4370_v29, %v4365_v52  ;;  %v1532_v38 = vrot.slane %v323_v0, 1 }
  0x53   : > { %v4523_v39 = vsel %vm949_vm3, %v5057_v11, %v5055_v59  ;;  %v5060_v9 = vmov %v5055_v59  ;;  %v1742_v19 = vsel %vm949_vm3, %v1739_v51, %v1741_v5  ;;  %v955_v61 = vrot.slane %v5061_v48, 2  ;;  %v5063_v59 = vld [vmem:[#allocation12_spill] sm:$0xff]  ;;  %v5066_v48 = vld [vmem:[#allocation13_spill] sm:$0xff] }
  0x54   : > { %v4535_v17 = vsel %vm949_vm3, %v5060_v9, %v5059_v27  ;;  %v956_v49 = vrot.slane %v5062_v2, 2  ;;  %v958_v11 = vrot.slane %v5063_v59, 2  ;;  %v4551_v37 = vpack.c.bf16 %v1742_v19, %v1740_v44 }
  0x55   : > { %v1062_v57 = vpack.c.bf16 %v4535_v17, %v4523_v39  ;;  %v4555_v52 = vpack.c.bf16 %v322_v34, %v321_v43  ;;  %v1531_v29 = vsel %vm392_vm1, %v1529_v33, %v1530_v10  ;;  %v1533_v0 = vsel %vm392_vm1, %v1530_v10, %v1532_v38  ;;  %v5064_v10 = vld [vmem:[#allocation14_spill] sm:$0xff]  ;;  %v5065_v38 = vld [vmem:[#allocation20_spill] sm:$0xff] }
  0x56   : > { %v327_v51 = vpack.c.bf16 %v5054_v45, %v5056_v60  ;;  %v957_v5 = vsel %vm949_vm3, %v955_v61, %v956_v49  ;;  %v959_v44 = vsel %vm949_vm3, %v956_v49, %v958_v11  ;;  %v4565_v27 = vpack.c.bf16 %v1533_v0, %v1531_v29  ;;  %v5067_v61 = vld [vmem:[#allocation16_spill] sm:$0xff]  ;;  %v324_v17 = vld [vmem:[%s4032_s22 + $0x198] sm:$0xff] }
  0x57   : > { %3242 = vmatmul.mubr.msk.bf16.gmra.mrb[24].mxu1 %vm523_vm2, %v4339_v1  ;;  %v1063_v43 = vpack.c.bf16 %v959_v44, %v957_v5  ;;  %v965_v34 = vrot.slane %v4074_v25, 2  ;;  %v966_v33 = vrot.slane %v4077_v26, 2  ;;  %v968_v9 = vrot.slane %v5064_v10, 2  ;;  %v2938_v25 = vld [vmem:[%s5005_s2 + $0x6] sm:$0x3] }
  0x58   : > { %3245 = vmatprep.mubr.msk.bf16.mxu1 %vm523_vm2, %v4527_v20  ;;  %v1129_v19 = vsel %vm572_vm0, %v5065_v38, 0  ;;  %v1954_v2 = vsel %vm572_vm0, %v5067_v61, 0  ;;  %v3006_v49 = vld [vmem:[%s5005_s2 + $0xe] sm:$0x3]  ;;  %v1331_v59 = vsel %vm572_vm0, %v2938_v25, 0  ;;  %v2361_v29 = vrot.slane %v324_v17, 2 }
  0x59   : > { %3378 = vmatmul.mubr.msk.bf16.gmra.mrb[24].mxu0 %vm523_vm2, %v4527_v20  ;;  %v967_v45 = vsel %vm949_vm3, %v965_v34, %v966_v33  ;;  %v969_v60 = vsel %vm949_vm3, %v966_v33, %v968_v9  ;;  %v2166_v11 = vsel %vm572_vm0, %v3006_v49, 0  ;;  %v3023_v39 = vld [vmem:[%s5005_s2 + $0x10] sm:$0x3]  ;;  %v5068_v10 = vld [vmem:[#allocation15_spill] sm:$0xff] }
  0x5a   : > { %3381 = vmatprep.mubr.msk.bf16.mxu0 %vm523_vm2, %v4541_v62  ;;  %v4585_v26 = vpack.c.bf16 %v969_v60, %v967_v45  ;;  %v2375_v9 = vsel %vm572_vm0, %v3023_v39, 0  ;;  %v5069_v45 = vld [vmem:[#allocation17_spill] sm:$0xff]  ;;  %v5070_v60 = vld [vmem:[#allocation18_spill] sm:$0xff]  ;;  %v5071_v38 = vld [vmem:[#allocation19_spill] sm:$0xff] }
  0x5f   : > { %3246 = vmatmul.mubr.msk.bf16.gmra.mrb[28].mxu1 %vm523_vm2, %v4541_v62 }
  0x60   : > { %3251 = vmatprep.mubr.msk.bf16.mxu1 %vm523_vm2, %v327_v51  ;;  %v326_v51 = vld [vmem:[%s4032_s22 + $0x1a8] sm:$0x3] }
  0x61   : > { %3382 = vmatmul.mubr.msk.bf16.gmra.mrb[28].mxu0 %vm523_vm2, %v4565_v27  ;;  %v2364_v44 = vrot.slane %v326_v51, 2 }
  0x62   : > { %3387 = vmatprep.mubr.msk.bf16.mxu0 %vm523_vm2, %v1063_v43 }
  0x67   : > { %3252 = vmatmul.mubr.msk.bf16.vlgmr.msra.gmra.mrb[0].mxu1 %vm523_vm2, %v5066_v48 }
  0x68   : > { %3255 = vmatprep.mubr.msk.bf16.mxu1 %vm523_vm2, %v4337_v47  ;;  %3284 = vmatpush3.bf16.msra.mxu1 %v1129_v19 }
  0x69   : > { %3800 = vmatprep.subr.msk.bf16.mxu1 %vm572_vm0, %v2938_v25  ;;  %3388 = vmatmul.mubr.msk.bf16.vlgmr.msra.gmra.mrb[0].mxu0 %vm523_vm2, %v4344_v8 }
  0x6a   : > { %3420 = vmatpush3.bf16.msra.mxu0 %v1954_v2  ;;  %3391 = vmatprep.mubr.msk.bf16.mxu0 %vm523_vm2, %v4585_v26 }
  0x6b   : > { %3804 = vmatprep.subr.msk.bf16.mxu0 %vm572_vm0, %v3006_v49 }
  0x6f   : > { %3256 = vmatmul.mubr.msk.bf16.gmra.mrb[4].mxu1 %vm523_vm2, %v4348_v28 }
  0x70   : > { %3259 = vmatprep.mubr.msk.bf16.mxu1 %vm523_vm2, %v4357_v22 }
  0x71   : > { %3392 = vmatmul.mubr.msk.bf16.gmra.mrb[4].mxu0 %vm523_vm2, %v4377_v23 }
  0x72   : > { %3395 = vmatprep.mubr.msk.bf16.mxu0 %vm523_vm2, %v4394_v46 }
  0x77   : > { %3260 = vmatmul.mubr.msk.bf16.gmra.mrb[8].mxu1 %vm523_vm2, %v4382_v13 }
  0x78   : > { %3263 = vmatprep.mubr.msk.bf16.mxu1 %vm523_vm2, %v4392_v40 }
  0x79   : > { %3396 = vmatmul.mubr.msk.bf16.gmra.mrb[8].mxu0 %vm523_vm2, %v4406_v58 }
  0x7a   : > { %3399 = vmatprep.mubr.msk.bf16.mxu0 %vm523_vm2, %v4413_v3 }
  0x7f   : > { %3264 = vmatmul.mubr.msk.bf16.gmra.mrb[12].mxu1 %vm523_vm2, %v4403_v21 }
  0x80   : > { %3267 = vmatprep.mubr.msk.bf16.mxu1 %vm523_vm2, %v4418_v63 }
  0x81   : > { %3400 = vmatmul.mubr.msk.bf16.gmra.mrb[12].mxu0 %vm523_vm2, %v4436_v55 }
  0x82   : > { %3403 = vmatprep.mubr.msk.bf16.mxu0 %vm523_vm2, %v4446_v24 }
  0x87   : > { %3268 = vmatmul.mubr.msk.bf16.gmra.mrb[16].mxu1 %vm523_vm2, %v4428_v30 }
  0x88   : > { %3271 = vmatprep.mubr.msk.bf16.mxu1 %vm523_vm2, %v4442_v16 }
  0x89   : > { %3404 = vmatmul.mubr.msk.bf16.gmra.mrb[16].mxu0 %vm523_vm2, %v4451_v18 }
  0x8a   : > { %3407 = vmatprep.mubr.msk.bf16.mxu0 %vm523_vm2, %v4472_v42 }
  0x8f   : > { %3272 = vmatmul.mubr.msk.bf16.gmra.mrb[20].mxu1 %vm523_vm2, %v4457_v35 }
  0x90   : > { %3275 = vmatprep.mubr.msk.bf16.mxu1 %vm523_vm2, %v4464_v36 }
  0x91   : > { %3408 = vmatmul.mubr.msk.bf16.gmra.mrb[20].mxu0 %vm523_vm2, %v4479_v14 }
  0x92   : > { %3411 = vmatprep.mubr.msk.bf16.mxu0 %vm523_vm2, %v4497_v12 }
  0x97   : > { %3276 = vmatmul.mubr.msk.bf16.gmra.mrb[24].mxu1 %vm523_vm2, %v4484_v4 }
  0x98   : > { %3279 = vmatprep.mubr.msk.bf16.mxu1 %vm523_vm2, %v4492_v41 }
  0x99   : > { %3412 = vmatmul.mubr.msk.bf16.gmra.mrb[24].mxu0 %vm523_vm2, %v4512_v32 }
  0x9a   : > { %3415 = vmatprep.mubr.msk.bf16.mxu0 %vm523_vm2, %v4516_v31 }
  0x9f   : > { %3280 = vmatmul.mubr.msk.bf16.gmra.mrb[28].mxu1 %vm523_vm2, %v4509_v50 }
  0xa0   : > { %3285 = vmatprep.mubr.msk.bf16.mxu1 %vm523_vm2, %v1062_v57  ;;  %v325_v57 = vld [vmem:[%s4032_s22 + $0x1a0] sm:$0xff] }
  0xa1   : > { %3416 = vmatmul.mubr.msk.bf16.gmra.mrb[28].mxu0 %vm523_vm2, %v4551_v37  ;;  %v2362_v0 = vrot.slane %v325_v57, 2  ;;  %v1947_v34 = vpack.c.bf16 %v325_v57, %v324_v17 }
  0xa2   : > { %3421 = vmatprep.mubr.msk.bf16.mxu0 %vm523_vm2, %v4337_v47 }
  0xa3   : > { %v4723_v5 = vsel %vm949_vm3, %v2361_v29, %v2362_v0 }
  0xa7   : > { %3286 = vmatmul.mubr.msk.bf16.vlgmr.msra.gmra.mrb[0].mxu1 %vm523_vm2, %v1063_v43  ;;  %v2365_v43 = vsel %vm949_vm3, %v2362_v0, %v2364_v44 }
  0xa8   : > { %3289 = vmatprep.mubr.msk.bf16.mxu1 %vm523_vm2, %v4344_v8  ;;  %3318 = vmatpush3.bf16.msra.mxu1 %v1331_v59  ;;  %v2368_v33 = vpack.c.bf16 %v2365_v43, %v4723_v5 }
  0xa9   : > { %3422 = vmatmul.mubr.msk.bf16.vlgmr.msra.gmra.mrb[0].mxu0 %vm523_vm2, %v4348_v28 }
  0xaa   : > { %3454 = vmatpush3.bf16.msra.mxu0 %v2166_v11  ;;  %3425 = vmatprep.mubr.msk.bf16.mxu0 %vm523_vm2, %v4357_v22 }
  0xab   : > { %3805 = vmatprep.subr.msk.bf16.mxu0 %vm572_vm0, %v3023_v39 }
  0xaf   : > { %3290 = vmatmul.mubr.msk.bf16.gmra.mrb[4].mxu1 %vm523_vm2, %v4585_v26 }
  0xb0   : > { %3293 = vmatprep.mubr.msk.bf16.mxu1 %vm523_vm2, %v4377_v23 }
  0xb1   : > { %3426 = vmatmul.mubr.msk.bf16.gmra.mrb[4].mxu0 %vm523_vm2, %v4382_v13 }
  0xb2   : > { %3429 = vmatprep.mubr.msk.bf16.mxu0 %vm523_vm2, %v4392_v40 }
  0xb7   : > { %3294 = vmatmul.mubr.msk.bf16.gmra.mrb[8].mxu1 %vm523_vm2, %v4394_v46 }
  0xb8   : > { %3297 = vmatprep.mubr.msk.bf16.mxu1 %vm523_vm2, %v4406_v58 }
  0xb9   : > { %3430 = vmatmul.mubr.msk.bf16.gmra.mrb[8].mxu0 %vm523_vm2, %v4403_v21 }
  0xba   : > { %3433 = vmatprep.mubr.msk.bf16.mxu0 %vm523_vm2, %v4418_v63 }
  0xbf   : > { %3298 = vmatmul.mubr.msk.bf16.gmra.mrb[12].mxu1 %vm523_vm2, %v4413_v3 }
  0xc0   : > { %3301 = vmatprep.mubr.msk.bf16.mxu1 %vm523_vm2, %v4436_v55 }
  0xc1   : > { %3434 = vmatmul.mubr.msk.bf16.gmra.mrb[12].mxu0 %vm523_vm2, %v4428_v30 }
  0xc2   : > { %3437 = vmatprep.mubr.msk.bf16.mxu0 %vm523_vm2, %v4442_v16 }
  0xc7   : > { %3302 = vmatmul.mubr.msk.bf16.gmra.mrb[16].mxu1 %vm523_vm2, %v4446_v24 }
  0xc8   : > { %3305 = vmatprep.mubr.msk.bf16.mxu1 %vm523_vm2, %v4451_v18 }
  0xc9   : > { %3438 = vmatmul.mubr.msk.bf16.gmra.mrb[16].mxu0 %vm523_vm2, %v4457_v35 }
  0xca   : > { %3441 = vmatprep.mubr.msk.bf16.mxu0 %vm523_vm2, %v4464_v36 }
  0xcf   : > { %3306 = vmatmul.mubr.msk.bf16.gmra.mrb[20].mxu1 %vm523_vm2, %v4472_v42 }
  0xd0   : > { %3309 = vmatprep.mubr.msk.bf16.mxu1 %vm523_vm2, %v4479_v14 }
  0xd1   : > { %3442 = vmatmul.mubr.msk.bf16.gmra.mrb[20].mxu0 %vm523_vm2, %v4484_v4 }
  0xd2   : > { %3445 = vmatprep.mubr.msk.bf16.mxu0 %vm523_vm2, %v4492_v41 }
  0xd7   : > { %3310 = vmatmul.mubr.msk.bf16.gmra.mrb[24].mxu1 %vm523_vm2, %v4497_v12 }
  0xd8   : > { %3313 = vmatprep.mubr.msk.bf16.mxu1 %vm523_vm2, %v4512_v32 }
  0xd9   : > { %3446 = vmatmul.mubr.msk.bf16.gmra.mrb[24].mxu0 %vm523_vm2, %v4509_v50 }
  0xda   : > { %3449 = vmatprep.mubr.msk.bf16.mxu0 %vm523_vm2, %v4555_v52 }
  0xdf   : > { %3314 = vmatmul.mubr.msk.bf16.gmra.mrb[28].mxu1 %vm523_vm2, %v4516_v31 }
  0xe0   : > { %3319 = vmatprep.mubr.msk.bf16.mxu1 %vm523_vm2, %v5066_v48 }
  0xe1   : > { %3450 = vmatmul.mubr.msk.bf16.gmra.mrb[28].mxu0 %vm523_vm2, %v1947_v34 }
  0xe2   : > { %3455 = vmatprep.mubr.msk.bf16.mxu0 %vm523_vm2, %v5068_v10 }
  0xe7   : > { %3320 = vmatmul.mubr.msk.bf16.vlgmr.msra.gmra.mrb[0].mxu1 %vm523_vm2, %v4337_v47  ;;  %v5072_v47 = vld [vmem:[#allocation23_spill] sm:$0xff] }
  0xe8   : > { %3323 = vmatprep.mubr.msk.bf16.mxu1 %vm523_vm2, %v4348_v28  ;;  %v3849_v28 = vld [vmem:[%s4833_s21 + $0x8] sm:$0xff]  }
  0xe9   : > { %3456 = vmatmul.mubr.msk.bf16.vlgmr.msra.gmra.mrb[0].mxu0 %vm523_vm2, %v5069_v45 }
  0xea   : > { %3488 = vmatpush3.bf16.msra.mxu0 %v2375_v9  ;;  %3459 = vmatprep.mubr.msk.bf16.mxu0 %vm523_vm2, %v5070_v60 }
  0xef   : > { %3324 = vmatmul.mubr.msk.bf16.gmra.mrb[4].mxu1 %vm523_vm2, %v4357_v22  ;;  %v3850_v22 = vld [vmem:[%s4833_s21 + $0x10] sm:$0xff]  }
  0xf0   : > { %3327 = vmatprep.mubr.msk.bf16.mxu1 %vm523_vm2, %v4382_v13 }
  0xf1   : > { %3460 = vmatmul.mubr.msk.bf16.gmra.mrb[4].mxu0 %vm523_vm2, %v5071_v38 }
  0xf2   : > { %3463 = vmatprep.mubr.msk.bf16.mxu0 %vm523_vm2, %v5072_v47 }
  0xf7   : > { %3328 = vmatmul.mubr.msk.bf16.gmra.mrb[8].mxu1 %vm523_vm2, %v4392_v40  ;;  %v3852_v40 = vld [vmem:[%s4833_s21 + $0x20] sm:$0xff]  }
  0xf8   : > { %3331 = vmatprep.mubr.msk.bf16.mxu1 %vm523_vm2, %v4403_v21 }
  0xf9   : > { %3464 = vmatmul.mubr.msk.bf16.gmra.mrb[8].mxu0 %vm523_vm2, %v4272_v53  ;;  %v2155_v53 = vrot.slane %v326_v51, 1 }
  0xfa   : > { %3467 = vmatprep.mubr.msk.bf16.mxu0 %vm523_vm2, %v4291_v6  ;;  %v2152_v6 = vrot.slane %v324_v17, 1 }
  0xff   : > { %3332 = vmatmul.mubr.msk.bf16.gmra.mrb[12].mxu1 %vm523_vm2, %v4418_v63 }
 0x100   : > { %3335 = vmatprep.mubr.msk.bf16.mxu1 %vm523_vm2, %v4428_v30 }
 0x101   : > { %3468 = vmatmul.mubr.msk.bf16.gmra.mrb[12].mxu0 %vm523_vm2, %v4293_v7  ;;  %v2153_v7 = vrot.slane %v325_v57, 1  ;;  %v4894_v57 = vld [vmem:[%s5006_s3] ss:$0 sm:$0xff] }
 0x102   : > { %3471 = vmatprep.mubr.msk.bf16.mxu0 %vm523_vm2, %v4315_v15 }
 0x103   : > { %v2154_v15 = vsel %vm392_vm1, %v2152_v6, %v2153_v7 }
 0x107   : > { %3336 = vmatmul.mubr.msk.bf16.gmra.mrb[16].mxu1 %vm523_vm2, %v4442_v16  ;;  %v3853_v16 = vld [vmem:[%s4833_s21 + $0x28] sm:$0xff]  }
 0x108   : > { %3339 = vmatprep.mubr.msk.bf16.mxu1 %vm523_vm2, %v4457_v35  ;;  %v3854_v35 = vld [vmem:[%s4833_s21 + $0x30] sm:$0xff]  }
 0x109   : > { %3472 = vmatmul.mubr.msk.bf16.gmra.mrb[16].mxu0 %vm523_vm2, %v4317_v56  ;;  %v2156_v56 = vsel %vm392_vm1, %v2153_v7, %v2155_v53 }
 0x10a   : > { %3475 = vmatprep.mubr.msk.bf16.mxu0 %vm523_vm2, %v4329_v54  ;;  %v2159_v54 = vpack.c.bf16 %v2156_v56, %v2154_v15 }
 0x10f   : > { %3340 = vmatmul.mubr.msk.bf16.gmra.mrb[20].mxu1 %vm523_vm2, %v4464_v36 }
 0x110   : > { %3343 = vmatprep.mubr.msk.bf16.mxu1 %vm523_vm2, %v4484_v4 }
 0x111   : > { %3476 = vmatmul.mubr.msk.bf16.gmra.mrb[20].mxu0 %vm523_vm2, %v4339_v1  ;;  %v3848_v1 = vld [vmem:[%s4833_s21] sm:$0xff]  }
 0x112   : > { %3479 = vmatprep.mubr.msk.bf16.mxu0 %vm523_vm2, %v4527_v20 }
 0x117   : > { %3344 = vmatmul.mubr.msk.bf16.gmra.mrb[24].mxu1 %vm523_vm2, %v4492_v41 }
 0x118   : > { %3347 = vmatprep.mubr.msk.bf16.mxu1 %vm523_vm2, %v4509_v50 }
 0x119   : > { %3480 = vmatmul.mubr.msk.bf16.gmra.mrb[24].mxu0 %vm523_vm2, %v4541_v62 }
 0x11a   : > { %3483 = vmatprep.mubr.msk.bf16.mxu0 %vm523_vm2, %v4565_v27 }
 0x11f   : > { %3348 = vmatmul.mubr.msk.bf16.gmra.mrb[28].mxu1 %vm523_vm2, %v4555_v52 }
 0x121   : > { %3484 = vmatmul.mubr.msk.bf16.gmra.mrb[28].mxu0 %vm523_vm2, %v2159_v54 }
 0x122   : > { %3489 = vmatprep.mubr.msk.bf16.mxu0 %vm523_vm2, %v4344_v8  ;;  %v3920_v8 = vmov 0.0  }
 0x123   : > { %3521 = vmatprep.subr.bf16.mxu1 %v3920_v8  ;;  %3537 = vmatprep.mubr.msk.bf16.mxu1 %vm3921_vm4, %v3920_v8 }
 0x124   : > { %3522 = vmatpush3.bf16.msra.mxu1 %v3848_v1 }
 0x125   : > { %3523 = vmatprep.subr.bf16.mxu1 %v3920_v8 }
 0x128   : > { %3524 = vmatpush3.bf16.msra.mxu1 %v3849_v28 }
 0x129   : > { %3490 = vmatmul.mubr.msk.bf16.vlgmr.msra.gmra.mrb[0].mxu0 %vm523_vm2, %v4585_v26  ;;  %3525 = vmatprep.subr.bf16.mxu1 %v3920_v8 }
 0x12a   : > { %3493 = vmatprep.mubr.msk.bf16.mxu0 %vm523_vm2, %v4377_v23  ;;  %v3851_v23 = vld [vmem:[%s4833_s21 + $0x18] sm:$0xff]  }
 0x12c   : > { %3526 = vmatpush3.bf16.msra.mxu1 %v3850_v22 }
 0x12d   : > { %3527 = vmatprep.subr.bf16.mxu1 %v3920_v8 }
 0x130   : > { %3528 = vmatpush3.bf16.msra.mxu1 %v3851_v23 }
 0x131   : > { %3494 = vmatmul.mubr.msk.bf16.gmra.mrb[4].mxu0 %vm523_vm2, %v4394_v46  ;;  %3529 = vmatprep.subr.bf16.mxu1 %v3920_v8 }
 0x132   : > { %3497 = vmatprep.mubr.msk.bf16.mxu0 %vm523_vm2, %v4406_v58 }
 0x134   : > { %3530 = vmatpush3.bf16.msra.mxu1 %v3852_v40 }
 0x135   : > { %3531 = vmatprep.subr.bf16.mxu1 %v3920_v8 }
 0x138   : > { %3532 = vmatpush3.bf16.msra.mxu1 %v3853_v16 }
 0x139   : > { %3498 = vmatmul.mubr.msk.bf16.gmra.mrb[8].mxu0 %vm523_vm2, %v4413_v3  ;;  %3533 = vmatprep.subr.bf16.mxu1 %v3920_v8 }
 0x13a   : > { %3501 = vmatprep.mubr.msk.bf16.mxu0 %vm523_vm2, %v4436_v55 }
 0x13c   : > { %3534 = vmatpush3.bf16.msra.mxu1 %v3854_v35 }
 0x13d   : > { %3535 = vmatprep.subr.bf16.mxu1 %v3920_v8 }
 0x141   : > { %3502 = vmatmul.mubr.msk.bf16.gmra.mrb[12].mxu0 %vm523_vm2, %v4446_v24 }
 0x142   : > { %3505 = vmatprep.mubr.msk.bf16.mxu0 %vm523_vm2, %v4451_v18 }
 0x149   : > { %3506 = vmatmul.mubr.msk.bf16.gmra.mrb[16].mxu0 %vm523_vm2, %v4472_v42 }
 0x14a   : > { %3509 = vmatprep.mubr.msk.bf16.mxu0 %vm523_vm2, %v4479_v14  ;;  %v3855_v14 = vld [vmem:[%s4833_s21 + $0x38] sm:$0xff]   ;;  %s3862_s21 = scalar_lea.vmem %s3861_s20, 32 }
 0x14b   : > { %3536 = vmatpush3.bf16.msra.mxu1 %v3855_v14  ;;  %p3864_p2 = scmp.lt.s32.totalorder %s3862_s21, %s3856_s0 }
 0x14d   : > { %p3865_p3 = por %p3864_p2, %p3863_p1 }
 0x14f   : > { %p3866_p4 = pnand %p3865_p3, %p3859_p0 }
 0x151   : > { %3510 = vmatmul.mubr.msk.bf16.gmra.mrb[20].mxu0 %vm523_vm2, %v4497_v12 }
 0x152   : > { %3513 = vmatprep.mubr.msk.bf16.mxu0 %vm523_vm2, %v4512_v32 }
 0x159   : > { %3514 = vmatmul.mubr.msk.bf16.gmra.mrb[24].mxu0 %vm523_vm2, %v4516_v31 }
 0x15a   : > { %3517 = vmatprep.mubr.msk.bf16.mxu0 %vm523_vm2, %v4551_v37 }
 0x161   : > { %3518 = vmatmul.mubr.msk.bf16.gmra.mrb[28].mxu0 %vm523_vm2, %v2368_v33 }
 0x1ba   : > { %v3321_v13 = vpop.f32.mrb[0].mxu1 }
 0x1bb   : > { %v1367_v46 = vpop.f32.mrb[1].mxu1 }
 0x1bc   : > { %v3322_v21 = vpop.f32.mrb[2].mxu1 }
 0x1bd   : > { %v1370_v58 = vpop.f32.mrb[3].mxu1 }
 0x1c2   : > { %v3325_v3 = vpop.f32.mrb[4].mxu1 }
 0x1c3   : > { %v1383_v63 = vpop.f32.mrb[5].mxu1 }
 0x1c4   : > { %v3326_v30 = vpop.f32.mrb[6].mxu1 }
 0x1c5   : > { %v1386_v55 = vpop.f32.mrb[7].mxu1 }
 0x1ca   : > { %v4841_v24 = vpop.f32.mrb[8].mxu1 }
 0x1cb   : > { %v4843_v18 = vpop.f32.mrb[9].mxu1 }
 0x1cc   : > { %v4846_v36 = vpop.f32.mrb[10].mxu1 }
 0x1cd   : > { %v4848_v42 = vpop.f32.mrb[11].mxu1 }
 0x1d2   : > { %v4851_v4 = vpop.f32.mrb[12].mxu1 }
 0x1d3   : > { %v4853_v41 = vpop.f32.mrb[13].mxu1 }
 0x1d4   : > { %v4855_v12 = vpop.f32.mrb[14].mxu1 }
 0x1d5   : > { %v4857_v50 = vpop.f32.mrb[15].mxu1 }
 0x1da   : > { %v4859_v32 = vpop.f32.mrb[16].mxu1 }
 0x1db   : > { %v4861_v31 = vpop.f32.mrb[17].mxu1 }
 0x1dc   : > { %v4863_v20 = vpop.f32.mrb[18].mxu1 }
 0x1dd   : > { %v4865_v62 = vpop.f32.mrb[19].mxu1 }
 0x1e2   : > { %v4867_v37 = vpop.f32.mrb[20].mxu1 }
 0x1e3   : > { %v4869_v52 = vpop.f32.mrb[21].mxu1 }
 0x1e4   : > { %v4871_v27 = vpop.f32.mrb[22].mxu1 }
 0x1e5   : > { %v4873_v19 = vpop.f32.mrb[23].mxu1 }
 0x1ea   : > { %v4875_v25 = vpop.f32.mrb[24].mxu1 }
 0x1eb   : > { %v4877_v48 = vpop.f32.mrb[25].mxu1 }
 0x1ec   : > { %v4879_v26 = vpop.f32.mrb[26].mxu1 }
 0x1ed   : > { %v4881_v61 = vpop.f32.mrb[27].mxu1 }
 0x1f2   : > { %v4883_v2 = vpop.f32.mrb[28].mxu1 }
 0x1f3   : > { %v4885_v49 = vpop.f32.mrb[29].mxu1 }
 0x1f4   : > { %v4887_v59 = vpop.f32.mrb[30].mxu1 }
 0x1f5   : > { %v4889_v11 = vpop.f32.mrb[31].mxu1 }
 0x1fc   : > { %v3491_v39 = vpop.f32.mrb[0].mxu0 }
 0x1fd   : > { %v3541_v17 = vadd.f32 %v3491_v39, %v3321_v13  ;;  %v2411_v29 = vpop.f32.mrb[1].mxu0 }
 0x1fe   : > { %v3542_v0 = vadd.f32 %v2411_v29, %v1367_v46  ;;  %v3492_v51 = vpop.f32.mrb[2].mxu0 }
 0x1ff   : > { %v3543_v5 = vadd.f32 %v3492_v51, %v3322_v21  ;;  %v2414_v44 = vpop.f32.mrb[3].mxu0  ;;  %v2579_v33 = vadd.f32 %v3541_v17, %v4894_v57 }
 0x200   : > { %v2577_v43 = vadd.f32 %v3542_v0, %v4894_v57  ;;  %v3544_v34 = vadd.f32 %v2414_v44, %v1370_v58 }
 0x201   : > { %v2580_v45 = vadd.f32 %v3543_v5, %v4894_v57  ;;  %v2611_v7 = vmax.f32 %v2579_v33, 0.0 }
 0x202   : > { %v2578_v10 = vadd.f32 %v3544_v34, %v4894_v57  ;;  %v2609_v9 = vmax.f32 %v2577_v43, 0.0 }
 0x203   : > { %v2612_v1 = vmax.f32 %v2580_v45, 0.0 }
 0x204   : > { %v2610_v60 = vmax.f32 %v2578_v10, 0.0  ;;  %v3495_v38 = vpop.f32.mrb[4].mxu0 }
 0x205   : > { %v3545_v47 = vadd.f32 %v3495_v38, %v3325_v3  ;;  %v2427_v6 = vpop.f32.mrb[5].mxu0 }
 0x206   : > { %v2641_v53 = vadd.f32 %v2610_v60, %v2609_v9  ;;  %v3546_v15 = vadd.f32 %v2427_v6, %v1383_v63  ;;  %v3496_v56 = vpop.f32.mrb[6].mxu0 }
 0x207   : > { %v3547_v54 = vadd.f32 %v3496_v56, %v3326_v30  ;;  %v2430_v8 = vpop.f32.mrb[7].mxu0  ;;  %v2583_v13 = vadd.f32 %v3545_v47, %v4894_v57 }
 0x208   : > { %v2642_v28 = vadd.f32 %v2641_v53, %v2611_v7  ;;  %v2581_v22 = vadd.f32 %v3546_v15, %v4894_v57  ;;  %v3548_v23 = vadd.f32 %v2430_v8, %v1386_v55 }
 0x209   : > { %v2584_v3 = vadd.f32 %v3547_v54, %v4894_v57  ;;  %v2615_v14 = vmax.f32 %v2583_v13, 0.0 }
 0x20a   : > { %v2613_v40 = vmax.f32 %v2581_v22, 0.0  ;;  %v2643_v46 = vadd.f32 %v2642_v28, %v2612_v1  ;;  %v2582_v21 = vadd.f32 %v3548_v23, %v4894_v57 }
 0x20b   : > { %v2616_v51 = vmax.f32 %v2584_v3, 0.0 }
 0x20c   : > { %v2644_v58 = vadd.f32 %v2643_v46, %v2613_v40  ;;  %v2614_v16 = vmax.f32 %v2582_v21, 0.0  ;;  %v3499_v35 = vpop.f32.mrb[8].mxu0 }
 0x20d   : > { %v3549_v63 = vadd.f32 %v3499_v35, %v4841_v24  ;;  %v2443_v30 = vpop.f32.mrb[9].mxu0 }
 0x20e   : > { %v2645_v39 = vadd.f32 %v2644_v58, %v2614_v16  ;;  %v3550_v17 = vadd.f32 %v2443_v30, %v4843_v18  ;;  %v3500_v29 = vpop.f32.mrb[10].mxu0 }
 0x20f   : > { %v3551_v55 = vadd.f32 %v3500_v29, %v4846_v36  ;;  %v2446_v0 = vpop.f32.mrb[11].mxu0  ;;  %v2587_v34 = vadd.f32 %v3549_v63, %v4894_v57 }
 0x210   : > { %v2646_v5 = vadd.f32 %v2645_v39, %v2615_v14  ;;  %v2585_v44 = vadd.f32 %v3550_v17, %v4894_v57  ;;  %v3552_v43 = vadd.f32 %v2446_v0, %v4848_v42 }
 0x211   : > { %v2588_v45 = vadd.f32 %v3551_v55, %v4894_v57  ;;  %v2619_v47 = vmax.f32 %v2587_v34, 0.0 }
 0x212   : > { %v2617_v33 = vmax.f32 %v2585_v44, 0.0  ;;  %v2647_v10 = vadd.f32 %v2646_v5, %v2616_v51  ;;  %v2586_v24 = vadd.f32 %v3552_v43, %v4894_v57 }
 0x213   : > { %v2620_v56 = vmax.f32 %v2588_v45, 0.0 }
 0x214   : > { %v2648_v9 = vadd.f32 %v2647_v10, %v2617_v33  ;;  %v2618_v18 = vmax.f32 %v2586_v24, 0.0  ;;  %v3503_v60 = vpop.f32.mrb[12].mxu0 }
 0x215   : > { %v3553_v36 = vadd.f32 %v3503_v60, %v4851_v4  ;;  %v2459_v38 = vpop.f32.mrb[13].mxu0 }
 0x216   : > { %v2649_v6 = vadd.f32 %v2648_v9, %v2618_v18  ;;  %v3554_v7 = vadd.f32 %v2459_v38, %v4853_v41  ;;  %v3504_v53 = vpop.f32.mrb[14].mxu0 }
 0x217   : > { %v3555_v42 = vadd.f32 %v3504_v53, %v4855_v12  ;;  %v2462_v15 = vpop.f32.mrb[15].mxu0  ;;  %v2591_v28 = vadd.f32 %v3553_v36, %v4894_v57 }
 0x218   : > { %v2650_v54 = vadd.f32 %v2649_v6, %v2619_v47  ;;  %v2589_v8 = vadd.f32 %v3554_v7, %v4894_v57  ;;  %v3556_v1 = vadd.f32 %v2462_v15, %v4857_v50 }
 0x219   : > { %v2592_v40 = vadd.f32 %v3555_v42, %v4894_v57  ;;  %v2623_v58 = vmax.f32 %v2591_v28, 0.0 }
 0x21a   : > { %v2621_v22 = vmax.f32 %v2589_v8, 0.0  ;;  %v2651_v23 = vadd.f32 %v2650_v54, %v2620_v56  ;;  %v2590_v4 = vadd.f32 %v3556_v1, %v4894_v57 }
 0x21b   : > { %v2624_v30 = vmax.f32 %v2592_v40, 0.0 }
 0x21c   : > { %v2652_v13 = vadd.f32 %v2651_v23, %v2621_v22  ;;  %v2622_v41 = vmax.f32 %v2590_v4, 0.0  ;;  %v3507_v46 = vpop.f32.mrb[16].mxu0 }
 0x21d   : > { %v3557_v12 = vadd.f32 %v3507_v46, %v4859_v32  ;;  %v2475_v21 = vpop.f32.mrb[17].mxu0 }
 0x21e   : > { %v2653_v3 = vadd.f32 %v2652_v13, %v2622_v41  ;;  %v3558_v16 = vadd.f32 %v2475_v21, %v4861_v31  ;;  %v3508_v35 = vpop.f32.mrb[18].mxu0 }
 0x21f   : > { %v3559_v50 = vadd.f32 %v3508_v35, %v4863_v20  ;;  %v2478_v63 = vpop.f32.mrb[19].mxu0  ;;  %v2595_v29 = vadd.f32 %v3557_v12, %v4894_v57 }
 0x220   : > { %v2654_v14 = vadd.f32 %v2653_v3, %v2623_v58  ;;  %v2593_v39 = vadd.f32 %v3558_v16, %v4894_v57  ;;  %v3560_v17 = vadd.f32 %v2478_v63, %v4865_v62 }
 0x221   : > { %v2596_v5 = vadd.f32 %v3559_v50, %v4894_v57  ;;  %v2627_v34 = vmax.f32 %v2595_v29, 0.0 }
 0x222   : > { %v2625_v55 = vmax.f32 %v2593_v39, 0.0  ;;  %v2655_v0 = vadd.f32 %v2654_v14, %v2624_v30  ;;  %v2594_v32 = vadd.f32 %v3560_v17, %v4894_v57 }
 0x223   : > { %v2628_v45 = vmax.f32 %v2596_v5, 0.0 }
 0x224   : > { %v2656_v51 = vadd.f32 %v2655_v0, %v2625_v55  ;;  %v2626_v31 = vmax.f32 %v2594_v32, 0.0  ;;  %v3511_v44 = vpop.f32.mrb[20].mxu0 }
 0x225   : > { %v3561_v20 = vadd.f32 %v3511_v44, %v4867_v37  ;;  %v2491_v43 = vpop.f32.mrb[21].mxu0 }
 0x226   : > { %v2657_v33 = vadd.f32 %v2656_v51, %v2626_v31  ;;  %v3562_v10 = vadd.f32 %v2491_v43, %v4869_v52  ;;  %v3512_v24 = vpop.f32.mrb[22].mxu0 }
 0x227   : > { %v3563_v62 = vadd.f32 %v3512_v24, %v4871_v27  ;;  %v2494_v9 = vpop.f32.mrb[23].mxu0  ;;  %v2599_v38 = vadd.f32 %v3561_v20, %v4894_v57 }
 0x228   : > { %v2658_v18 = vadd.f32 %v2657_v33, %v2627_v34  ;;  %v2597_v60 = vadd.f32 %v3562_v10, %v4894_v57  ;;  %v3564_v36 = vadd.f32 %v2494_v9, %v4873_v19 }
 0x229   : > { %v2600_v53 = vadd.f32 %v3563_v62, %v4894_v57  ;;  %v2631_v56 = vmax.f32 %v2599_v38, 0.0 }
 0x22a   : > { %v2629_v47 = vmax.f32 %v2597_v60, 0.0  ;;  %v2659_v6 = vadd.f32 %v2658_v18, %v2628_v45  ;;  %v2598_v37 = vadd.f32 %v3564_v36, %v4894_v57 }
 0x22b   : > { %v2632_v22 = vmax.f32 %v2600_v53, 0.0 }
 0x22c   : > { %v2660_v7 = vadd.f32 %v2659_v6, %v2629_v47  ;;  %v2630_v52 = vmax.f32 %v2598_v37, 0.0  ;;  %v3515_v42 = vpop.f32.mrb[24].mxu0 }
 0x22d   : > { %v3565_v27 = vadd.f32 %v3515_v42, %v4875_v25  ;;  %v2507_v15 = vpop.f32.mrb[25].mxu0 }
 0x22e   : > { %v2661_v54 = vadd.f32 %v2660_v7, %v2630_v52  ;;  %v3566_v8 = vadd.f32 %v2507_v15, %v4877_v48  ;;  %v3516_v1 = vpop.f32.mrb[26].mxu0 }
 0x22f   : > { %v3567_v19 = vadd.f32 %v3516_v1, %v4879_v26  ;;  %v2510_v28 = vpop.f32.mrb[27].mxu0  ;;  %v2603_v40 = vadd.f32 %v3565_v27, %v4894_v57 }
 0x230   : > { %v2662_v23 = vadd.f32 %v2661_v54, %v2631_v56  ;;  %v2601_v4 = vadd.f32 %v3566_v8, %v4894_v57  ;;  %v3568_v13 = vadd.f32 %v2510_v28, %v4881_v61 }
 0x231   : > { %v2604_v21 = vadd.f32 %v3567_v19, %v4894_v57  ;;  %v2635_v16 = vmax.f32 %v2603_v40, 0.0 }
 0x232   : > { %v2633_v41 = vmax.f32 %v2601_v4, 0.0  ;;  %v2663_v46 = vadd.f32 %v2662_v23, %v2632_v22  ;;  %v2602_v25 = vadd.f32 %v3568_v13, %v4894_v57 }
 0x233   : > { %v2636_v14 = vmax.f32 %v2604_v21, 0.0 }
 0x234   : > { %v2664_v12 = vadd.f32 %v2663_v46, %v2633_v41  ;;  %v2634_v48 = vmax.f32 %v2602_v25, 0.0  ;;  %v3519_v58 = vpop.f32.mrb[28].mxu0 }
 0x235   : > { %v3569_v26 = vadd.f32 %v3519_v58, %v4883_v2  ;;  %v2523_v3 = vpop.f32.mrb[29].mxu0 }
 0x236   : > { %v2665_v35 = vadd.f32 %v2664_v12, %v2634_v48  ;;  %v3570_v50 = vadd.f32 %v2523_v3, %v4885_v49  ;;  %v3520_v63 = vpop.f32.mrb[30].mxu0 }
 0x237   : > { %v3571_v61 = vadd.f32 %v3520_v63, %v4887_v59  ;;  %v2526_v30 = vpop.f32.mrb[31].mxu0  ;;  %v2607_v55 = vadd.f32 %v3569_v26, %v4894_v57 }
 0x238   : > { %v2666_v39 = vadd.f32 %v2665_v35, %v2635_v16  ;;  %v2605_v17 = vadd.f32 %v3570_v50, %v4894_v57  ;;  %v3572_v29 = vadd.f32 %v2526_v30, %v4889_v11 }
 0x239   : > { %v2608_v5 = vadd.f32 %v3571_v61, %v4894_v57  ;;  %v2639_v59 = vmax.f32 %v2607_v55, 0.0 }
 0x23a   : > { %v2637_v0 = vmax.f32 %v2605_v17, 0.0  ;;  %v2667_v32 = vadd.f32 %v2666_v39, %v2636_v14  ;;  %v2606_v2 = vadd.f32 %v3572_v29, %v4894_v57  ;;  %v2696_v57 = vld [vmem:[%s270_s11] sm:$0x1] }
 0x23b   : > { %v2640_v44 = vmax.f32 %v2608_v5, 0.0 }
 0x23c   : > { %v2668_v51 = vadd.f32 %v2667_v32, %v2637_v0  ;;  %v2638_v49 = vmax.f32 %v2606_v2, 0.0 }
 0x23e   : > { %v2669_v31 = vadd.f32 %v2668_v51, %v2638_v49 }
 0x240   : > { %v2670_v20 = vadd.f32 %v2669_v31, %v2639_v59 }
 0x242   : > { %v2671_v43 = vadd.f32 %v2670_v20, %v2640_v44 }
 0x244   : > { %v2672_v34 = vrot.slane %v2671_v43, 4 }
 0x246   : > { %v2673_v11 = vadd.f32 %v2672_v34, %v2671_v43 }
 0x248   : > { %v2674_v33 = vrot.slane %v2673_v11, 2 }
 0x24a   : > { %v2675_v10 = vadd.f32 %v2674_v33, %v2673_v11 }
 0x24c   : > { %v2676_v24 = vrot.slane %v2675_v10, 1 }
 0x24e   : > { %v2677_v62 = vadd.f32 %v2676_v24, %v2675_v10 }
 0x250   : > { %v2678_v9 = vmul.f32 0.00390625, %v2677_v62 }
 0x252   : > { %v2679_v45 = vpack.c.bf16 %v2678_v9, %v2678_v9 }
 0x254   : > { %3538 = vmatmul.mubr.bf16.vlgmr.msra.gmra.mrb[32].mxu1 %v2679_v45 }
 0x327   : > { %v2779_v18 = vpop.f32.mrb[32].mxu1 }
 0x328   : > { %v2780_v60 = vadd.f32 %v2779_v18, %v2696_v57  ;;  %v3539_v36 = vpop.f32.mrb[33].mxu1 }
 0x329   : > { %v2782_v38 = vpop.f32.mrb[34].mxu1 }
 0x32a   : > { %2785 = vst [vmem:[%s254_s13] sm:$0x1] %v2780_v60  ;;  %v3540_v47 = vpop.f32.mrb[35].mxu1 }
 0x32b   : > { %3869 = shalt.err (!%p3866_p4)
}
 0x32c   : > { %s3870_s22 = scalar_lea.hbm %s4961_s18, 16  ;;  %s3874_s30 = scalar_lea.hbm %s5009_s6, 32 }
 0x32d   : > { %p3871_p7 = scmp.ne.s32.totalorder %s4961_s18, %s3870_s22  ;;  %p3875_p10 = scmp.lt.u32.totalorder %s4961_s18, %s5009_s6 }
 0x32e   : > { %p3876_p11 = scmp.lt.u32.totalorder %s3874_s30, %s3870_s22  ;;  %p3878_p13 = scmp.lt.u32.totalorder %s3870_s22, %s4961_s18 }
 0x32f   : > { %p3872_p8 = pnand %p3871_p7, %p3999_p5 }
 0x330   : > { %p3877_p12 = por %p3876_p11, %p3875_p10 }
 0x331   : > { %p3873_p9 = pneg %p3872_p8 }
 0x332   : > { %p3879_p0 = por %p3878_p13, %p3877_p12 }
 0x334   : > { %p3880_p1 = pnand %p3879_p0, %p3873_p9 }
 0x336   : > { %3883 = shalt.err (!%p3880_p1)
}
 0x337   : > { %3807 = dma.vmem_to_hbm [thread:$0]  (%p3999_p5), %s4963_s14, 16, %s4961_s18, %s2787_s17  }
 0x338 PF: > { %p3813_p2 = scmp.ge.s32.totalorder %s3918_s26, 2  ;;  %s2811_s12 = sand.u32 1, %s3906_s23  }
 0x339   : > { %s2812_s13 = scalar_lea.sflag [#allocation5], %s2811_s12 }
 0x33a   : > { %p3810_p3 = pnand %p3813_p2, %p4003_p6 }
 0x33c   : > { %3901 = dma.done.wait (!%p3810_p3), %s2812_s13, 16  }
 0x33d   : > { %3903 = vsyncadd (!%p3810_p3), %s2812_s13, 4294967280  ;;  %p17_p4 = scmp.ge.s32.totalorder %s3986_s28, 4   ;;  %s5073_s23 = smov %s3910_s24 }
 0x33e   : > { %s5074_s24 = smov %s3914_s25  ;;  %s5075_s25 = smov %s3997_s7 }
 0x33f   : > { %s5076_s26 = smov %s3986_s28  ;;  %19 = sbr.rel (!%p17_p4) target bundleno = 5 (0x5), region = 89 }
 0x346   :  { %2816 = vsyncpa [#allocation5], 1 }
 0x347   :  { %2818 = vsyncpa [#allocation5 + $0x1], 1 }

</bundles_post_ra>
